<compile_context>
chip_gen: v5e
topology: v5e:2x2
jax: 0.10.0
libtpu: 0.0.40
codegen_flags: <defaults>
</compile_context>

<pallas_src>
import jax
import jax.numpy as jnp
from jax.experimental import pallas as pl
from jax.experimental.pallas import tpu as pltpu


def _round_up(x, m):
    return ((x + m - 1) // m) * m


def _plan_blocks(batch, n, feat, emb_dtype, block_b=None):
    """Pick (graphs per grid step, number of grid steps, vmem_limit_bytes)."""
    itemsize = jnp.dtype(emb_dtype).itemsize
    sublane = 8 * max(1, 4 // itemsize)            # 8 rows / sublane tile (f32), 16 (bf16)
    # Lane-padded VMEM bytes of one graph's (N, F) slab in the input dtype.
    in_tile = _round_up(n, sublane) * _round_up(feat, 128) * itemsize
    # Per-graph live VMEM: double-buffered input (2x) + ~2 same-dtype
    # elementwise intermediates (e*tg, e*s) + small f32 logit/score slabs.
    per_graph = 4 * in_tile + 2 * _round_up(n, 8) * 128 * 4

    vmem_cap = 64 * 1024 * 1024                    # conservative default (v7x-class)
    try:
        vmem_cap = int(pltpu.get_tpu_info().vmem_capacity_bytes)
    except Exception:
        pass
    # ~96 MiB scoped limit on 128 MiB parts (v5e/v6e), ~48 MiB on 64 MiB parts.
    vmem_limit = min((vmem_cap * 3) // 4, 96 * 1024 * 1024)
    budget = (vmem_limit * 2) // 3                 # headroom: W, outputs, compiler scratch
    two_core = vmem_cap <= 64 * 1024 * 1024        # 64 MiB VMEM => v7x-class, 2 TCs/chip

    if block_b is not None:
        bb = int(block_b)
    else:
        bb = max(1, budget // per_graph)
        if two_core and batch >= 2:
            # Keep >=2 grid steps so ("parallel",) can shard the batch axis
            # across both TensorCores; never force a split on 1-TC parts.
            bb = min(bb, pl.cdiv(batch, 2))
    if bb >= batch:
        return batch, 1, vmem_limit                # one block == full batch (no alignment needed)

    # Multi-block: the (bb, F)/(bb, N) output blocks need a sublane-aligned bb.
    # TODO(synk): very large graphs (N >~ 2k nodes) would additionally need
    # node-axis blocking; SimGNN graphs are far below that.
    bb = max(min(8, batch), (bb // 8) * 8)
    num_blocks = pl.cdiv(batch, bb)
    if two_core and num_blocks % 2 == 1:
        # Prefer an even block count so both TensorCores stay busy.
        alt = max(8, _round_up(pl.cdiv(batch, num_blocks + 1), 8))
        if alt != bb and pl.cdiv(batch, alt) % 2 == 0:
            bb, num_blocks = alt, pl.cdiv(batch, alt)
    return bb, num_blocks, vmem_limit


def _attention_kernel(emb_ref, w_ref, rep_ref, score_ref):
    """One grid step: a block of Bb graphs.

    emb_ref   : (Bb, N, F) embeddings in the caller's dtype (f32 or bf16)
    w_ref     : (F, F)     weight matrix
    rep_ref   : (Bb, F)    graph representations, f32 (dense stores)
    score_ref : (Bb, N)    per-node sigmoid scores, f32 (dense stores)
    """
    e = emb_ref[...]
    n = e.shape[1]

    # (1) Global context with the mean hoisted through the matmul:
    #     mean_n(e @ W) == (sum_n e) @ W * (1/N).  One node-axis reduce with
    #     f32 accumulation plus a tiny (Bb, F) x (F, F) matmul; no (Bb*N, F)
    #     MXU pass and no full-tile f32 intermediate.
    e_sum = jnp.sum(e, axis=1, dtype=jnp.float32)                    # (Bb, F)
    gc = jnp.dot(e_sum, w_ref[...].astype(jnp.float32),
                 preferred_element_type=jnp.float32) * (1.0 / n)     # (Bb, F)
    tg = jnp.tanh(gc)                                                # (Bb, F) f32 (EUP)

    # (2) Per-node logits + sigmoid, computed exactly ONCE.  The elementwise
    #     product runs in the input dtype (bf16 on v6e/v7x when the caller
    #     feeds bf16); the feature reduce accumulates in f32.
    tg_b = tg.astype(e.dtype)[:, None, :]                            # (Bb, 1, F)
    logits = jnp.sum(e * tg_b, axis=-1, dtype=jnp.float32)           # (Bb, N)
    scores = jax.nn.sigmoid(logits)                                  # (Bb, N) f32

    # (3) Attention-weighted pooling: rep[b, f] = sum_n s[b, n] * e[b, n, f].
    #     Input-dtype multiply, f32 accumulation over the node axis.
    s3 = scores[:, :, None].astype(e.dtype)                          # (Bb, N, 1)
    rep = jnp.sum(e * s3, axis=1, dtype=jnp.float32)                 # (Bb, F)

    rep_ref[...] = rep
    score_ref[...] = scores


def attention_module_forward(embedding, weight_matrix, *, block_b=None):
    """Pallas TPU implementation of SimGNN AttentionModule.forward.

    The embedding is consumed in whatever dtype the producer hands over
    (pass bf16 only when it is already bf16 upstream; no wrapper-side cast or
    pad is performed).  Accumulation and activations are f32.

    Returns:
      representation: (B, F, 1) float32
      sigmoid_scores: (B, N, 1) float32
    """
    B, N, F = embedding.shape
    assert weight_matrix.shape == (F, F)

    bb, num_blocks, vmem_limit = _plan_blocks(B, N, F, embedding.dtype, block_b)

    rep_2d, scores_2d = pl.pallas_call(
        _attention_kernel,
        out_shape=(
            jax.ShapeDtypeStruct((B, F), jnp.float32),   # representation
            jax.ShapeDtypeStruct((B, N), jnp.float32),   # sigmoid scores
        ),
        grid_spec=pltpu.PrefetchScalarGridSpec(
            num_scalar_prefetch=0,
            grid=(num_blocks,),
            in_specs=[
                # Each block covers the full (N, F) extent -> no node padding
                # and no alignment requirement on N or F.
                pl.BlockSpec((bb, N, F), lambda b: (b, 0, 0)),
                pl.BlockSpec((F, F), lambda b: (0, 0)),
            ],
            out_specs=[
                pl.BlockSpec((bb, F), lambda b: (b, 0)),
                pl.BlockSpec((bb, N), lambda b: (b, 0)),
            ],
        ),
        compiler_params=pltpu.CompilerParams(
            dimension_semantics=("parallel",),
            vmem_limit_bytes=int(vmem_limit),
        ),
    )(embedding, weight_matrix)

    # Restore the PyTorch output shapes; trailing-1 reshapes are metadata-only.
    representation = rep_2d.reshape(B, F, 1)
    sigmoid_scores = scores_2d.reshape(B, N, 1)
    return representation, sigmoid_scores


def _reference(embedding, weight_matrix):
    """Pure-JAX reference mirroring the PyTorch forward (true-f32 matmuls)."""
    hp = jax.lax.Precision.HIGHEST
    gc = jnp.mean(jnp.matmul(embedding, weight_matrix, precision=hp), axis=1)   # (B, F)
    tg = jnp.tanh(gc)                                                            # (B, F)
    scores = jax.nn.sigmoid(jnp.matmul(embedding, tg[:, :, None], precision=hp))  # (B, N, 1)
    rep = jnp.matmul(jnp.transpose(embedding, (0, 2, 1)), scores, precision=hp)   # (B, F, 1)
    return rep, scores


def _rel_err(a, b):
    a = a.astype(jnp.float32).ravel()
    b = b.astype(jnp.float32).ravel()
    return jnp.linalg.norm(a - b) / (jnp.linalg.norm(b) + 1e-12)


if __name__ == "__main__":
    # batch, nodes, filters_dim[-1]; N deliberately not sublane-aligned to show
    # that no padding / extra HBM pass is needed.
    B, N, F = 32, 10, 32

    key = jax.random.PRNGKey(0)
    k_emb, k_w = jax.random.split(key)
    embedding = jax.random.normal(k_emb, (B, N, F), dtype=jnp.float32)
    # Xavier-uniform init of the (F, F) weight matrix (deterministic).
    bound = (6.0 / (F + F)) ** 0.5
    weight_matrix = jax.random.uniform(
        k_w, (F, F), dtype=jnp.float32, minval=-bound, maxval=bound)

    rep_ref, scores_ref = _reference(embedding, weight_matrix)

    # f32 path (default): matches the PyTorch forward to f32 tolerance.
    rep, scores = attention_module_forward(embedding, weight_matrix)
    rep, scores = jax.block_until_ready((rep, scores))
    assert rep.shape == (B, F, 1) and scores.shape == (B, N, 1)
    assert jnp.allclose(rep, rep_ref, atol=1e-4, rtol=1e-4)
    assert jnp.allclose(scores, scores_ref, atol=1e-4, rtol=1e-4)

    # Explicit multi-block path (exercises batch blocking / both-TC sharding).
    rep_b, scores_b = attention_module_forward(embedding, weight_matrix, block_b=16)
    rep_b, scores_b = jax.block_until_ready((rep_b, scores_b))
    assert jnp.allclose(rep_b, rep_ref, atol=1e-4, rtol=1e-4)
    assert jnp.allclose(scores_b, scores_ref, atol=1e-4, rtol=1e-4)

    # bf16-producer path: used only when the embedding already arrives as bf16
    # (no wrapper cast); elementwise work runs in bf16 with f32 accumulation,
    # so compare against an f32 reference evaluated on bf16-quantized inputs.
    emb16 = embedding.astype(jnp.bfloat16)
    w16 = weight_matrix.astype(jnp.bfloat16)
    rep16, scores16 = attention_module_forward(emb16, w16)
    rep16, scores16 = jax.block_until_ready((rep16, scores16))
    rep_ref16, scores_ref16 = _reference(
        emb16.astype(jnp.float32), w16.astype(jnp.float32))
    assert _rel_err(scores16, scores_ref16) < 5e-2
    assert _rel_err(rep16, rep_ref16) < 5e-2

    print("KERNEL_OK")
</pallas_src>

<mosaic_0001>
module attributes {stable_mosaic.version = 11 : i64} {
  func.func @_attention_kernel(%arg0: i32, %arg1: memref<16x10x32xf32, #tpu.memory_space<vmem>>, %arg2: memref<32x32xf32, #tpu.memory_space<vmem>>, %arg3: memref<16x32xf32, #tpu.memory_space<vmem>>, %arg4: memref<16x10xf32, #tpu.memory_space<vmem>>) attributes {dimension_semantics = [#tpu.dimension_semantics<parallel>], iteration_bounds = array<i64: 2>, scalar_prefetch = 0 : i64, scratch_operands = 0 : i64, tpu.core_type = #tpu.core_type<tc>, window_params = [{transform_indices = @transform_0, window_bounds = array<i64: 16, 10, 32>}, {pipeline_mode = #tpu.pipeline_mode<synchronous>, transform_indices = @transform_1, window_bounds = array<i64: 32, 32>}, {transform_indices = @transform_2, window_bounds = array<i64: 16, 32>}, {transform_indices = @transform_3, window_bounds = array<i64: 16, 10>}]} {
    %c0 = arith.constant 0 : index
    %c0_0 = arith.constant 0 : index
    %c0_1 = arith.constant 0 : index
    %0 = vector.load %arg1[%c0, %c0_0, %c0_1] : memref<16x10x32xf32, #tpu.memory_space<vmem>>, vector<16x10x32xf32>
    %cst = arith.constant dense<0.000000e+00> : vector<16x32xf32>
    %1 = vector.multi_reduction <add>, %0, %cst [1] : vector<16x10x32xf32> to vector<16x32xf32>
    %c0_2 = arith.constant 0 : index
    %c0_3 = arith.constant 0 : index
    %2 = vector.load %arg2[%c0_2, %c0_3] : memref<32x32xf32, #tpu.memory_space<vmem>>, vector<32x32xf32>
    %cst_4 = arith.constant dense<0.000000e+00> : vector<16x32xf32>
    %3 = tpu.matmul %1, %2, %cst_4 {dimension_numbers = #tpu.dot_dimension_numbers<[1], [0], [0], [1], [0, 0, 1, 1], [], []>} : vector<16x32xf32>, vector<32x32xf32>, vector<16x32xf32> -> vector<16x32xf32>
    %cst_5 = arith.constant 1.000000e-01 : f32
    %4 = vector.broadcast %cst_5 : f32 to vector<16x32xf32>
    %5 = arith.mulf %3, %4 : vector<16x32xf32>
    %6 = math.tanh %5 : vector<16x32xf32>
    %7 = vector.shape_cast %6 : vector<16x32xf32> to vector<16x1x32xf32>
    %8 = vector.broadcast %7 : vector<16x1x32xf32> to vector<16x10x32xf32>
    %9 = arith.mulf %0, %8 : vector<16x10x32xf32>
    %cst_6 = arith.constant dense<0.000000e+00> : vector<16x10xf32>
    %10 = vector.multi_reduction <add>, %9, %cst_6 [2] : vector<16x10x32xf32> to vector<16x10xf32>
    %11 = arith.negf %10 : vector<16x10xf32>
    %12 = math.exp %11 : vector<16x10xf32>
    %cst_7 = arith.constant 1.000000e+00 : f32
    %13 = vector.broadcast %cst_7 : f32 to vector<16x10xf32>
    %14 = arith.addf %13, %12 : vector<16x10xf32>
    %15 = arith.divf %13, %14 : vector<16x10xf32>
    %16 = vector.shape_cast %15 : vector<16x10xf32> to vector<16x10x1xf32>
    %17 = vector.broadcast %16 : vector<16x10x1xf32> to vector<16x10x32xf32>
    %18 = arith.mulf %0, %17 : vector<16x10x32xf32>
    %cst_8 = arith.constant dense<0.000000e+00> : vector<16x32xf32>
    %19 = vector.multi_reduction <add>, %18, %cst_8 [1] : vector<16x10x32xf32> to vector<16x32xf32>
    %c0_9 = arith.constant 0 : index
    %c0_10 = arith.constant 0 : index
    %20 = vector.load %arg3[%c0_9, %c0_10] : memref<16x32xf32, #tpu.memory_space<vmem>>, vector<16x32xf32>
    tpu.vector_store %arg3[%c0_9, %c0_10], %19 {strides = array<i32>} : memref<16x32xf32, #tpu.memory_space<vmem>>, vector<16x32xf32>,
    %c0_11 = arith.constant 0 : index
    %c0_12 = arith.constant 0 : index
    %21 = vector.load %arg4[%c0_11, %c0_12] : memref<16x10xf32, #tpu.memory_space<vmem>>, vector<16x10xf32>
    tpu.vector_store %arg4[%c0_11, %c0_12], %15 {strides = array<i32>} : memref<16x10xf32, #tpu.memory_space<vmem>>, vector<16x10xf32>,
    return
  }
  func.func @transform_0(%arg0: i32) -> (i32, i32, i32) {
    %c0_i32 = arith.constant 0 : i32
    %c0_i32_0 = arith.constant 0 : i32
    %c0_i32_1 = arith.constant 0 : i32
    return %arg0, %c0_i32, %c0_i32_0 : i32, i32, i32
  }
  func.func @transform_1(%arg0: i32) -> (i32, i32) {
    %c0_i32 = arith.constant 0 : i32
    %c0_i32_0 = arith.constant 0 : i32
    %c0_i32_1 = arith.constant 0 : i32
    return %c0_i32, %c0_i32_0 : i32, i32
  }
  func.func @transform_2(%arg0: i32) -> (i32, i32) {
    %c0_i32 = arith.constant 0 : i32
    %c0_i32_0 = arith.constant 0 : i32
    return %arg0, %c0_i32 : i32, i32
  }
  func.func @transform_3(%arg0: i32) -> (i32, i32) {
    %c0_i32 = arith.constant 0 : i32
    %c0_i32_0 = arith.constant 0 : i32
    return %arg0, %c0_i32 : i32, i32
  }
}

</mosaic_0001>

<bundles_post_ra>
// kernel: tpu_custom_call.1
= control target key start
LH: loop header
LB: loop body
LE: loop exit
PB: predicated region body
PF: predicated region fallthrough
CT: control target
= control target key end

     0   :  { %9 = vsyncpa [#allocation3], 0  ;;  %s3368_s0 = inlined_call_operand.vmem [shape: f32[32,10,32], index: 0, kind: input, shape index: {}]   ;;  %s3369_s1 = inlined_call_operand.vmem [shape: f32[32,32], index: 1, kind: input, shape index: {}]   ;;  %s3370_s2 = inlined_call_operand.hbm [shape: f32[32,32], index: 2, kind: output, shape index: {0}]   ;;  %s3371_s3 = inlined_call_operand.vmem [shape: f32[32,10], index: 3, kind: output, shape index: {1}]  }
   0x1   :  { %11 = vsyncpa [#allocation3 + $0x1], 0  ;;  %s1986_s12 = smov 0   ;;  %s1988_s13 = smov 0  }
   0x2   :  { %s1990_s14 = smov 0   ;;  %s1992_s15 = smov 0  }
   0x3 LB: > { %s2007_s16 = sadd.s32 4294967295, %s1962_s15   ;;  %s1648_s17 = sadd.s32 4294967294, %s1962_s15   ;;  %s1962_s15 = sphi %s1992_s15, %s3465_s15   ;;  %s1958_s14 = sphi %s1990_s14, %s3464_s14   ;;  %s1954_s13 = sphi %s1988_s13, %s3463_s13   ;;  %s1950_s12 = sphi %s1986_s12, %s3462_s12  }
   0x4   : > { %s2011_s18 = sadd.s32 1, %s1962_s15   ;;  %s71_s19 = sadd.s32 1, %s1958_s14 }
   0x5   : > { %s68_s20 = ssub.s32 %s1962_s15, %s2011_s18  ;;  %p81_p0 = scmp.ne.s32.totalorder %s1958_s14, %s1954_s13 }
   0x6   : > { %p69_p1 = scmp.eq.s32.totalorder %s68_s20, 0  ;;  %p82_p2 = scmp.eq.s32.totalorder %s2007_s16, 1 }
   0x7   : > { %p87_p3 = scmp.ne.s32.totalorder %s1954_s13, %s1950_s12  ;;  %p88_p4 = scmp.eq.s32.totalorder %s1648_s17, 1 }
   0x8   : > { %s2022_s21 = scalar_select %p69_p1, %s1958_s14, %s71_s19  }
   0x9   : > { %p2024_p5 = por %p82_p2, %p81_p0  ;;  %p2028_p6 = por %p88_p4, %p87_p3 }
   0xa   : > { %p1651_p7 = scmp.ge.s32.totalorder %s1962_s15, 1  ;;  %p145_p8 = scmp.lt.s32.totalorder %s1962_s15, 3 }
   0xc   : > { %p146_p9 = pnand %p1651_p7, %p145_p8 }
   0xd   : > { %s2041_s28 = sshll.u32 (!%p146_p9), %s2007_s16, 4  ;;  %s1656_s11 = sshll.u32 (!%p146_p9), %s2007_s16, 1 }
   0xe   : > { %149 = sbr.rel (%p146_p9) target bundleno = 530 (0x212), region = 28  ;;  %p176_p10 = scmp.lt.s32.totalorder (!%p146_p9), %s2041_s28, 31 }
   0xf   : > { %p3153_p11 = scmp.lt.s32.totalorder (!%p146_p9), %s1656_s11, 3  ;;  %s165_s25 = sand.u32 (!%p146_p9), 1, %s1954_s13  }
  0x10   : > { %s1652_s26 = sshll.u32 (!%p146_p9), %s165_s25, 4 }
  0x11   : > { %s3300_s27 = scalar_lea.vmem (!%p146_p9), [#allocation2], %s1652_s26 }
  0x12   : > { %s1554_s5 = sshll.u32 (!%p146_p9), %s3300_s27, 4  ;;  %s1555_s5 = int_to_ptr.vmem [resolvable:$true] %s1554_s5 }
  0x13   : > { %v370_v0 = vld [vmem:[%s3369_s1 + $0x18] sm:$0xff]  ;;  %v369_v1 = vld [vmem:[%s3369_s1 + $0x10] sm:$0xff]  ;;  %v368_v2 = vld [vmem:[%s3369_s1 + $0x8] sm:$0xff]  ;;  %s177_s4 = scalar_select %p176_p10, %s2041_s28, 31  ;;  %vm221_vm0 = vcmask 261120   ;;  %vm223_vm1 = vcmask 254976  }
  0x14   : > { %424 = vmatpush.msra.mxu0 %v370_v0  ;;  %1699 = vmatpush.msra.mxu1 %v370_v0  ;;  %v367_v3 = vld [vmem:[%s3369_s1] sm:$0xff]  ;;  %vm387_vm2 = vcmask 1041409   ;;  %vm389_vm3 = vcmask 1042434   ;;  %vm391_vm4 = vcmask 1043459   ;;  %vm393_vm5 = vcmask 1044484   ;;  %s3467_s11 = smov (!%p3153_p11, %s1656_s11), 3 }
  0x15   : > { %s1697_s7 = sshll.u32 %s177_s4, 4  ;;  %vm3374_vm6 = vcmask 1045509   ;;  %vm3373_vm7 = vcmask 1046534   ;;  %vm3372_vm8 = vcmask 1047559   ;;  %s1657_s16 = sshll.u32 %s3467_s11, 3 }
  0x16   : > { %425 = vmatpush.msra.mxu0 %v369_v1  ;;  %1700 = vmatpush.msra.mxu1 %v369_v1  ;;  %s2054_s10 = scalar_lea.vmem %s3368_s0, %s1697_s7  ;;  %s3217_s24 = scalar_lea.vmem %s3371_s3, %s1657_s16 }
  0x17   : > { %v2057_v4 = vld [vmem:[%s2054_s10] sm:$0xff]  ;;  %v2060_v5 = vld [vmem:[%s2054_s10 + $0x8] sm:$0x3]  ;;  %v2063_v6 = vld [vmem:[%s2054_s10 + $0x10] sm:$0xff]  ;;  %s1553_s4 = scalar_lea.hbm %s3370_s2, %s2041_s28  ;;  %s1537_s28 = scalar_lea.sflag [#allocation3], %s165_s25 }
  0x18   : > { %426 = vmatpush.msra.mxu0 %v368_v2  ;;  %1701 = vmatpush.msra.mxu1 %v368_v2  ;;  %v2066_v7 = vld [vmem:[%s2054_s10 + $0x18] sm:$0x3]  ;;  %v2069_v8 = vld [vmem:[%s2054_s10 + $0x20] sm:$0xff]  ;;  %v2072_v9 = vld [vmem:[%s2054_s10 + $0x28] sm:$0x3]  ;;  %v222_v10 = vsel %vm221_vm0, %v2057_v4, 0.0 }
  0x19   : > { %v2077_v11 = vld [vmem:[%s2054_s10 + $0x30] sm:$0xff]  ;;  %v2080_v12 = vld [vmem:[%s2054_s10 + $0x38] sm:$0x3]  ;;  %v224_v13 = vsel %vm223_vm1, %v2060_v5, 0.0  ;;  %v232_v14 = vsel %vm221_vm0, %v2063_v6, 0.0  ;;  %v2087_v15 = vld [vmem:[%s2054_s10 + $0x40] sm:$0xff] }
  0x1a   : > { %427 = vmatpush.msra.mxu0 %v367_v3  ;;  %1702 = vmatpush.msra.mxu1 %v367_v3  ;;  %v2090_v16 = vld [vmem:[%s2054_s10 + $0x48] sm:$0x3]  ;;  %v225_v17 = vadd.f32 %v224_v13, %v222_v10  ;;  %v233_v18 = vsel %vm223_vm1, %v2066_v7, 0.0  ;;  %v2095_v19 = vld [vmem:[%s2054_s10 + $0x50] sm:$0xff]  ;;  %v241_v21 = vsel %vm221_vm0, %v2069_v8, 0.0  ;;  %v242_v22 = vsel %vm223_vm1, %v2072_v9, 0.0 }
  0x1b   : > { %v234_v20 = vadd.f32 %v233_v18, %v232_v14  ;;  %v2102_v23 = vld [vmem:[%s2054_s10 + $0x58] sm:$0x3]  ;;  %v2105_v24 = vld [vmem:[%s2054_s10 + $0x60] sm:$0xff]  ;;  %v243_v26 = vadd.f32 %v242_v22, %v241_v21  ;;  %v250_v27 = vsel %vm221_vm0, %v2077_v11, 0.0  ;;  %v251_v28 = vsel %vm223_vm1, %v2080_v12, 0.0  ;;  %v2119_v34 = vld [vmem:[%s2054_s10 + $0x70] sm:$0xff] }
  0x1c   : > { %v226_v25 = vrot.slane %v225_v17, 4  ;;  %v252_v30 = vadd.f32 %v251_v28, %v250_v27  ;;  %v259_v31 = vsel %vm221_vm0, %v2087_v15, 0.0  ;;  %v260_v32 = vsel %vm223_vm1, %v2090_v16, 0.0  ;;  %v2116_v33 = vld [vmem:[%s2054_s10 + $0x68] sm:$0x3]  ;;  %v2137_v10 = vld [vmem:[%s2054_s10 + $0x80] sm:$0xff] }
  0x1d   : > { %v235_v29 = vrot.slane %v234_v20, 4  ;;  %v244_v36 = vrot.slane %v243_v26, 4  ;;  %v261_v37 = vadd.f32 %v260_v32, %v259_v31  ;;  %v268_v38 = vsel %vm221_vm0, %v2095_v19, 0.0  ;;  %v2128_v43 = vld [vmem:[%s2054_s10 + $0x78] sm:$0x3]  ;;  %s3328_s6 = sshll.u32 %s1553_s4, 4  ;;  %s1557_s6 = int_to_ptr.hbm [resolvable:$true] %s3328_s6 }
  0x1e   : > { %v227_v35 = vadd.f32 %v226_v25, %v225_v17  ;;  %v253_v40 = vrot.slane %v252_v30, 4  ;;  %v269_v41 = vsel %vm223_vm1, %v2102_v23, 0.0  ;;  %v277_v42 = vsel %vm221_vm0, %v2105_v24, 0.0  ;;  %s1914_s7 = sshra.s32 %s1557_s6, 4  ;;  %s1920_s11 = scalar_lea.hbm %s3370_s2, 32  ;;  %s1915_s7 = int_to_ptr.hbm [resolvable:$true] %s1914_s7 }
  0x1f   : > { %v236_v39 = vadd.f32 %v235_v29, %v234_v20  ;;  %v245_v45 = vadd.f32 %v244_v36, %v243_v26  ;;  %v262_v46 = vrot.slane %v261_v37, 4  ;;  %v270_v47 = vadd.f32 %v269_v41, %v268_v38  ;;  %v2140_v26 = vld [vmem:[%s2054_s10 + $0x88] sm:$0x3]  ;;  %v2149_v38 = vld [vmem:[%s2054_s10 + $0x98] sm:$0x3]  ;;  %s1916_s8 = scalar_lea.hbm %s1915_s7, 16  ;;  %p1921_p1 = scmp.lt.s32.totalorder %s1915_s7, %s3370_s2 }
  0x20   : > { %v228_v44 = vrot.slane %v227_v35, 2  ;;  %v254_v49 = vadd.f32 %v253_v40, %v252_v30  ;;  %v278_v50 = vsel %vm223_vm1, %v2116_v33, 0.0  ;;  %v286_v51 = vsel %vm221_vm0, %v2119_v34, 0.0  ;;  %p1917_p12 = scmp.ne.s32.totalorder %s1915_s7, %s1916_s8  ;;  %p1922_p2 = scmp.lt.s32.totalorder %s1920_s11, %s1916_s8 }
  0x21   : > { %v237_v48 = vrot.slane %v236_v39, 2  ;;  %v246_v53 = vrot.slane %v245_v45, 2  ;;  %v263_v54 = vadd.f32 %v262_v46, %v261_v37  ;;  %v271_v55 = vrot.slane %v270_v47, 4  ;;  %v2146_v37 = vld [vmem:[%s2054_s10 + $0x90] sm:$0xff] }
  0x22   : > { %v229_v52 = vadd.f32 %v228_v44, %v227_v35  ;;  %v255_v57 = vrot.slane %v254_v49, 2  ;;  %v279_v58 = vadd.f32 %v278_v50, %v277_v42  ;;  %v287_v59 = vsel %vm223_vm1, %v2128_v43, 0.0  ;;  %p1918_p13 = pnand %p1917_p12, %p2024_p5  ;;  %p1923_p3 = por %p1922_p2, %p1921_p1 }
  0x23   : > { %v238_v56 = vadd.f32 %v237_v48, %v236_v39  ;;  %v247_v61 = vadd.f32 %v246_v53, %v245_v45  ;;  %v264_v62 = vrot.slane %v263_v54, 2  ;;  %v272_v63 = vadd.f32 %v271_v55, %v270_v47  ;;  %v2156_v47 = vld [vmem:[%s2054_s10 + $0xa0] sm:$0xff]  ;;  %v2159_v48 = vld [vmem:[%s2054_s10 + $0xa8] sm:$0x3] }
  0x24   : > { %v230_v60 = vrot.slane %v229_v52, 1  ;;  %v256_v1 = vadd.f32 %v255_v57, %v254_v49  ;;  %v280_v2 = vrot.slane %v279_v58, 4  ;;  %v288_v3 = vadd.f32 %v287_v59, %v286_v51  ;;  %v2162_v49 = vld [vmem:[%s2054_s10 + $0xb0] sm:$0xff]  ;;  %v2166_v53 = vld [vmem:[%s2054_s10 + $0xc0] sm:$0xff]  ;;  %v2176_v59 = vld [vmem:[%s2054_s10 + $0xc8] sm:$0x3]  ;;  %p1919_p0 = pneg %p1918_p13 }
  0x25   : > { %v239_v0 = vrot.slane %v238_v56, 1  ;;  %v248_v14 = vrot.slane %v247_v61, 1  ;;  %v265_v17 = vadd.f32 %v264_v62, %v263_v54  ;;  %v273_v18 = vrot.slane %v272_v63, 2 }
  0x26   : > { %v231_v13 = vadd.f32 %v230_v60, %v229_v52  ;;  %v257_v21 = vrot.slane %v256_v1, 1  ;;  %v281_v22 = vadd.f32 %v280_v2, %v279_v58  ;;  %v289_v25 = vrot.slane %v288_v3, 4  ;;  %v2173_v58 = vld [vmem:[%s2054_s10 + $0xb8] sm:$0x3]  ;;  %p1924_p4 = pnand %p1923_p3, %p1919_p0 }
  0x27   : > { %v240_v20 = vadd.f32 %v239_v0, %v238_v56  ;;  %v249_v27 = vadd.f32 %v248_v14, %v247_v61  ;;  %v266_v28 = vrot.slane %v265_v17, 1  ;;  %v274_v29 = vadd.f32 %v273_v18, %v272_v63  ;;  %v2189_v18 = vld [vmem:[%s2054_s10 + $0xd8] sm:$0x3] }
  0x28   : > { %v295_v30 = vsel %vm221_vm0, %v2137_v10, 0.0  ;;  %v258_v31 = vadd.f32 %v257_v21, %v256_v1  ;;  %v282_v32 = vrot.slane %v281_v22, 2  ;;  %v290_v35 = vadd.f32 %v289_v25, %v288_v3 }
  0x29   : > { %v388_v36 = vsel %vm387_vm2, %v240_v20, %v231_v13  ;;  %v267_v39 = vadd.f32 %v266_v28, %v265_v17  ;;  %v275_v40 = vrot.slane %v274_v29, 1  ;;  %v296_v42 = vsel %vm223_vm1, %v2140_v26, 0.0  ;;  %v2186_v13 = vld [vmem:[%s2054_s10 + $0xd0] sm:$0xff] }
  0x2a   : > { %v390_v41 = vsel %vm389_vm3, %v249_v27, %v388_v36  ;;  %v283_v44 = vadd.f32 %v282_v32, %v281_v22  ;;  %v291_v45 = vrot.slane %v290_v35, 2  ;;  %v297_v50 = vadd.f32 %v296_v42, %v295_v30  ;;  %v2202_v32 = vld [vmem:[%s2054_s10 + $0xe8] sm:$0x3] }
  0x2b   : > { %v392_v46 = vsel %vm391_vm4, %v258_v31, %v390_v41  ;;  %v276_v51 = vadd.f32 %v275_v40, %v274_v29  ;;  %v304_v54 = vsel %vm221_vm0, %v2146_v37, 0.0  ;;  %v305_v55 = vsel %vm223_vm1, %v2149_v38, 0.0  ;;  %v2199_v31 = vld [vmem:[%s2054_s10 + $0xe0] sm:$0xff] }
  0x2c   : > { %v394_v52 = vsel %vm393_vm5, %v267_v39, %v392_v46  ;;  %v284_v56 = vrot.slane %v283_v44, 1  ;;  %v292_v57 = vadd.f32 %v291_v45, %v290_v35  ;;  %v298_v60 = vrot.slane %v297_v50, 4  ;;  %v2211_v46 = vld [vmem:[%s2054_s10 + $0xf0] sm:$0xff] }
  0x2d   : > { %v306_v61 = vadd.f32 %v305_v55, %v304_v54  ;;  %v396_v62 = vsel %vm3374_vm6, %v276_v51, %v394_v52  ;;  %v313_v63 = vsel %vm221_vm0, %v2156_v47, 0.0  ;;  %v314_v0 = vsel %vm223_vm1, %v2159_v48, 0.0 }
  0x2e   : > { %v322_v1 = vsel %vm221_vm0, %v2162_v49, 0.0  ;;  %v285_v2 = vadd.f32 %v284_v56, %v283_v44  ;;  %v293_v3 = vrot.slane %v292_v57, 1  ;;  %v299_v14 = vadd.f32 %v298_v60, %v297_v50 }
  0x2f   : > { %v307_v17 = vrot.slane %v306_v61, 4  ;;  %v315_v20 = vadd.f32 %v314_v0, %v313_v63  ;;  %v323_v21 = vsel %vm223_vm1, %v2173_v58, 0.0  ;;  %v331_v22 = vsel %vm221_vm0, %v2166_v53, 0.0 }
  0x30   : > { %v332_v25 = vsel %vm223_vm1, %v2176_v59, 0.0  ;;  %v294_v27 = vadd.f32 %v293_v3, %v292_v57  ;;  %v398_v28 = vsel %vm3373_vm7, %v285_v2, %v396_v62  ;;  %v300_v29 = vrot.slane %v299_v14, 2 }
  0x31   : > { %v308_v30 = vadd.f32 %v307_v17, %v306_v61  ;;  %v316_v35 = vrot.slane %v315_v20, 4  ;;  %v324_v36 = vadd.f32 %v323_v21, %v322_v1  ;;  %v333_v39 = vadd.f32 %v332_v25, %v331_v22  ;;  %v2218_v61 = vld [vmem:[%s2054_s10 + $0xf8] sm:$0x3] }
  0x32   : > { %v340_v40 = vsel %vm221_vm0, %v2186_v13, 0.0  ;;  %v400_v41 = vsel %vm3372_vm8, %v294_v27, %v398_v28  ;;  %v301_v42 = vadd.f32 %v300_v29, %v299_v14  ;;  %v341_v45 = vsel %vm223_vm1, %v2189_v18, 0.0 }
  0x33   : > { %v309_v44 = vrot.slane %v308_v30, 2  ;;  %1658 = vmatmul.msk.f32.vlgmr.msra.gmra.mxu0 %vm221_vm0, %v400_v41  ;;  %v317_v50 = vadd.f32 %v316_v35, %v315_v20  ;;  %v325_v51 = vrot.slane %v324_v36, 4  ;;  %v334_v52 = vrot.slane %v333_v39, 4 }
  0x34   : > { %v342_v54 = vadd.f32 %v341_v45, %v340_v40  ;;  %v302_v55 = vrot.slane %v301_v42, 1  ;;  %v349_v57 = vsel %vm221_vm0, %v2199_v31, 0.0  ;;  %v350_v60 = vsel %vm223_vm1, %v2202_v32, 0.0 }
  0x35   : > { %v310_v56 = vadd.f32 %v309_v44, %v308_v30  ;;  %v318_v62 = vrot.slane %v317_v50, 2  ;;  %v326_v63 = vadd.f32 %v325_v51, %v324_v36  ;;  %v335_v0 = vadd.f32 %v334_v52, %v333_v39 }
  0x36   : > { %v343_v1 = vrot.slane %v342_v54, 4  ;;  %v303_v2 = vadd.f32 %v302_v55, %v301_v42  ;;  %v351_v14 = vadd.f32 %v350_v60, %v349_v57  ;;  %v358_v17 = vsel %vm221_vm0, %v2211_v46, 0.0 }
  0x37   : > { %v311_v3 = vrot.slane %v310_v56, 1  ;;  %v319_v20 = vadd.f32 %v318_v62, %v317_v50  ;;  %v327_v21 = vrot.slane %v326_v63, 2  ;;  %v336_v22 = vrot.slane %v335_v0, 2 }
  0x38   : > { %v344_v25 = vadd.f32 %v343_v1, %v342_v54  ;;  %v352_v28 = vrot.slane %v351_v14, 4  ;;  %v359_v29 = vsel %vm223_vm1, %v2218_v61, 0.0 }
  0x39   : > { %v312_v27 = vadd.f32 %v311_v3, %v310_v56  ;;  %v320_v30 = vrot.slane %v319_v20, 1  ;;  %v328_v35 = vadd.f32 %v327_v21, %v326_v63  ;;  %v337_v36 = vadd.f32 %v336_v22, %v335_v0 }
  0x3a   : > { %v345_v39 = vrot.slane %v344_v25, 2  ;;  %v353_v40 = vadd.f32 %v352_v28, %v351_v14  ;;  %v360_v41 = vadd.f32 %v359_v29, %v358_v17 }
  0x3b   : > { %v401_v42 = vsel %vm387_vm2, %v312_v27, %v303_v2  ;;  %v321_v44 = vadd.f32 %v320_v30, %v319_v20  ;;  %v329_v45 = vrot.slane %v328_v35, 1  ;;  %v338_v51 = vrot.slane %v337_v36, 1 }
  0x3c   : > { %v346_v50 = vadd.f32 %v345_v39, %v344_v25  ;;  %v354_v52 = vrot.slane %v353_v40, 2  ;;  %v361_v55 = vrot.slane %v360_v41, 4 }
  0x3d   : > { %v330_v54 = vadd.f32 %v329_v45, %v328_v35  ;;  %v339_v56 = vadd.f32 %v338_v51, %v337_v36  ;;  %v402_v60 = vsel %vm389_vm3, %v321_v44, %v401_v42 }
  0x3e   : > { %v347_v57 = vrot.slane %v346_v50, 1  ;;  %v355_v62 = vadd.f32 %v354_v52, %v353_v40  ;;  %v362_v1 = vadd.f32 %v361_v55, %v360_v41 }
  0x3f   : > { %v403_v0 = vsel %vm391_vm4, %v330_v54, %v402_v60 }
  0x40   : > { %v348_v63 = vadd.f32 %v347_v57, %v346_v50  ;;  %v356_v3 = vrot.slane %v355_v62, 1  ;;  %v363_v14 = vrot.slane %v362_v1, 2  ;;  %v404_v2 = vsel %vm393_vm5, %v339_v56, %v403_v0 }
  0x42   : > { %v357_v17 = vadd.f32 %v356_v3, %v355_v62  ;;  %v364_v20 = vadd.f32 %v363_v14, %v362_v1  ;;  %v405_v21 = vsel %vm3374_vm6, %v348_v63, %v404_v2 }
  0x44   : > { %v365_v22 = vrot.slane %v364_v20, 1  ;;  %v406_v25 = vsel %vm3373_vm7, %v357_v17, %v405_v21 }
  0x46   : > { %v366_v27 = vadd.f32 %v365_v22, %v364_v20 }
  0x48   : > { %v407_v28 = vsel %vm3372_vm8, %v366_v27, %v406_v25 }
  0x49   : > { %1659 = vmatmul.msk.f32.vlgmr.msra.gmra.mxu1 %vm221_vm0, %v407_v28 }
  0xb0   : > { %v429_v29 = vpop.f32.mrf.mxu0 }
  0xb1   : > { %v435_v30 = vmul.f32 0.1, %v429_v29 }
  0xb3   : > { %1744 = vtanh.f32 %v435_v30 }
  0xb9   : > { %v2232_v35 = vpop.eup %1744 }
  0xba   : > { %v455_v36 = vperm.slane %v2232_v35, 0  ;;  %v441_v39 = vrot.slane %v2232_v35, 1  ;;  %v442_v1 = vrot.slane %v2232_v35, 2 }
  0xbc   : > { %v487_v40 = vmul.f32 %v455_v36, %v2057_v4  ;;  %v456_v41 = vperm.slane %v441_v39, 0  ;;  %v488_v51 = vmul.f32 %v455_v36, %v2060_v5  ;;  %v457_v20 = vperm.slane %v442_v1, 0 }
  0xbd   : > { %v443_v36 = vrot.slane %v2232_v35, 3 }
  0xbe   : > { %v519_v42 = vsel %vm221_vm0, %v487_v40, 0.0  ;;  %v489_v44 = vmul.f32 %v456_v41, %v2063_v6  ;;  %v490_v50 = vmul.f32 %v456_v41, %v2066_v7  ;;  %v522_v55 = vsel %vm223_vm1, %v488_v51, 0.0 }
  0xbf   : > { %520 = vadd.xlane.f32.xlu0 %v519_v42  ;;  %v492_v29 = vmul.f32 %v457_v20, %v2072_v9  ;;  %v458_v41 = vperm.slane %v443_v36, 0  ;;  %v491_v42 = vmul.f32 %v457_v20, %v2069_v8  ;;  %v447_v36 = vrot.slane %v2232_v35, 7 }
  0xc0   : > { %v525_v45 = vsel %vm221_vm0, %v489_v44, 0.0  ;;  %v528_v56 = vsel %vm223_vm1, %v490_v50, 0.0 }
  0xc1   : > { %526 = vadd.xlane.f32.xlu1 %v525_v45  ;;  %v534_v39 = vsel %vm223_vm1, %v492_v29, 0.0  ;;  %v493_v44 = vmul.f32 %v458_v41, %v2077_v11  ;;  %v494_v9 = vmul.f32 %v458_v41, %v2080_v12  ;;  %v531_v51 = vsel %vm221_vm0, %v491_v42, 0.0 }
  0xc3   : > { %v537_v50 = vsel %vm221_vm0, %v493_v44, 0.0  ;;  %v462_v44 = vperm.slane %v447_v36, 0 }
  0xc6   : > { %v432_v52 = vpop.f32.mrf.mxu1 }
  0xc7   : > { %v436_v54 = vmul.f32 0.1, %v432_v52  ;;  %523 = vadd.xlane.f32.xlu0 %v522_v55  ;;  %v540_v55 = vsel %vm223_vm1, %v494_v9, 0.0 }
  0xc9   : > { %1746 = vtanh.f32 %v436_v54  ;;  %529 = vadd.xlane.f32.xlu1 %v528_v56 }
  0xcf   : > { %v2244_v57 = vpop.eup %1746 }
  0xd0   : > { %v463_v60 = vperm.slane %v2244_v57, 0  ;;  %v448_v62 = vrot.slane %v2244_v57, 1  ;;  %v449_v3 = vrot.slane %v2244_v57, 2  ;;  %v450_v45 = vrot.slane %v2244_v57, 3 }
  0xd1   : > { %v451_v12 = vrot.slane %v2244_v57, 4 }
  0xd2   : > { %v503_v63 = vmul.f32 %v463_v60, %v2137_v10  ;;  %v464_v0 = vperm.slane %v448_v62, 0  ;;  %v504_v21 = vmul.f32 %v463_v60, %v2140_v26  ;;  %v465_v27 = vperm.slane %v449_v3, 0 }
  0xd3   : > { %v466_v52 = vperm.slane %v450_v45, 0  ;;  %v452_v3 = vrot.slane %v2244_v57, 5  ;;  %v501_v45 = vmul.f32 %v462_v44, %v2119_v34 }
  0xd4   : > { %v567_v14 = vsel %vm221_vm0, %v503_v63, 0.0  ;;  %v505_v2 = vmul.f32 %v464_v0, %v2146_v37  ;;  %v506_v17 = vmul.f32 %v464_v0, %v2149_v38  ;;  %v570_v28 = vsel %vm223_vm1, %v504_v21, 0.0 }
  0xd5   : > { %568 = vadd.xlane.f32.xlu2 %v567_v14  ;;  %v507_v30 = vmul.f32 %v465_v27, %v2156_v47  ;;  %v444_v47 = vrot.slane %v2232_v35, 4  ;;  %v508_v8 = vmul.f32 %v465_v27, %v2159_v48  ;;  %v510_v11 = vmul.f32 %v466_v52, %v2173_v58 }
  0xd6   : > { %v573_v22 = vsel %vm221_vm0, %v505_v2, 0.0  ;;  %v576_v25 = vsel %vm223_vm1, %v506_v17, 0.0  ;;  %v467_v63 = vperm.slane %v451_v12, 0  ;;  %v509_v0 = vmul.f32 %v466_v52, %v2162_v49 }
  0xd7   : > { %574 = vadd.xlane.f32.xlu0 %v573_v22  ;;  %577 = vadd.xlane.f32.xlu1 %v576_v25  ;;  %v579_v40 = vsel %vm221_vm0, %v507_v30, 0.0  ;;  %v459_v54 = vperm.slane %v444_v47, 0  ;;  %v582_v60 = vsel %vm223_vm1, %v508_v8, 0.0  ;;  %v588_v62 = vsel %vm223_vm1, %v510_v11, 0.0 }
  0xd8   : > { %v511_v48 = vmul.f32 %v467_v63, %v2166_v53  ;;  %v445_v58 = vrot.slane %v2232_v35, 5  ;;  %v585_v14 = vsel %vm221_vm0, %v509_v0, 0.0  ;;  %v468_v21 = vperm.slane %v452_v3, 0 }
  0xd9   : > { %v495_v56 = vmul.f32 %v459_v54, %v2087_v15  ;;  %v512_v15 = vmul.f32 %v467_v63, %v2176_v59  ;;  %v496_v49 = vmul.f32 %v459_v54, %v2090_v16  ;;  %v446_v59 = vrot.slane %v2232_v35, 6 }
  0xda   : > { %v591_v2 = vsel %vm221_vm0, %v511_v48, 0.0  ;;  %v460_v17 = vperm.slane %v445_v58, 0  ;;  %v513_v22 = vmul.f32 %v468_v21, %v2186_v13  ;;  %v561_v47 = vsel %vm221_vm0, %v501_v45, 0.0 }
  0xdb   : > { %v543_v1 = vsel %vm221_vm0, %v495_v56, 0.0  ;;  %v594_v20 = vsel %vm223_vm1, %v512_v15, 0.0  ;;  %v546_v25 = vsel %vm223_vm1, %v496_v49, 0.0  ;;  %v461_v29 = vperm.slane %v446_v59, 0 }
  0xdc   : > { %v498_v53 = vmul.f32 %v460_v17, %v2102_v23  ;;  %v497_v30 = vmul.f32 %v460_v17, %v2095_v19  ;;  %v453_v23 = vrot.slane %v2244_v57, 6  ;;  %v514_v19 = vmul.f32 %v468_v21, %v2189_v18 }
  0xdd   : > { %571 = vadd.xlane.f32.xlu2 %v570_v28  ;;  %v597_v28 = vsel %vm221_vm0, %v513_v22, 0.0  ;;  %v499_v16 = vmul.f32 %v461_v29, %v2105_v24  ;;  %v500_v13 = vmul.f32 %v461_v29, %v2116_v33  ;;  %v454_v33 = vrot.slane %v2244_v57, 7 }
  0xde   : > { %v552_v27 = vsel %vm223_vm1, %v498_v53, 0.0  ;;  %v469_v41 = vperm.slane %v453_v23, 0  ;;  %v600_v35 = vsel %vm223_vm1, %v514_v19, 0.0 }
  0xdf   : > { %535 = vadd.xlane.f32.xlu0 %v534_v39  ;;  %580 = vadd.xlane.f32.xlu1 %v579_v40  ;;  %v549_v39 = vsel %vm221_vm0, %v497_v30, 0.0  ;;  %v555_v40 = vsel %vm221_vm0, %v499_v16, 0.0  ;;  %v558_v42 = vsel %vm223_vm1, %v500_v13, 0.0 }
  0xe0   : > { %v516_v24 = vmul.f32 %v469_v41, %v2202_v32 }
  0xe2   : > { %v606_v9 = vsel %vm223_vm1, %v516_v24, 0.0 }
  0xe5   : > { %532 = vadd.xlane.f32.xlu2 %v531_v51  ;;  %v470_v51 = vperm.slane %v454_v33, 0 }
  0xe7   : > { %538 = vadd.xlane.f32.xlu0 %v537_v50  ;;  %541 = vadd.xlane.f32.xlu1 %v540_v55  ;;  %v515_v50 = vmul.f32 %v469_v41, %v2199_v31  ;;  %v517_v18 = vmul.f32 %v470_v51, %v2211_v46  ;;  %v518_v32 = vmul.f32 %v470_v51, %v2218_v61 }
  0xe8   : > { %v502_v55 = vmul.f32 %v462_v44, %v2128_v43 }
  0xe9   : > { %v603_v34 = vsel %vm221_vm0, %v515_v50, 0.0  ;;  %v609_v57 = vsel %vm221_vm0, %v517_v18, 0.0  ;;  %v612_v52 = vsel %vm223_vm1, %v518_v32, 0.0 }
  0xea   : > { %v564_v54 = vsel %vm223_vm1, %v502_v55, 0.0 }
  0xed   : > { %583 = vadd.xlane.f32.xlu2 %v582_v60 }
  0xef   : > { %589 = vadd.xlane.f32.xlu0 %v588_v62  ;;  %544 = vadd.xlane.f32.xlu1 %v543_v1 }
  0xf5   : > { %586 = vadd.xlane.f32.xlu2 %v585_v14 }
  0xf7   : > { %592 = vadd.xlane.f32.xlu0 %v591_v2  ;;  %595 = vadd.xlane.f32.xlu1 %v594_v20 }
  0xfd   : > { %547 = vadd.xlane.f32.xlu2 %v546_v25 }
  0xff   : > { %553 = vadd.xlane.f32.xlu0 %v552_v27  ;;  %598 = vadd.xlane.f32.xlu1 %v597_v28 }
 0x105   : > { %550 = vadd.xlane.f32.xlu2 %v549_v39 }
 0x107   : > { %556 = vadd.xlane.f32.xlu0 %v555_v40  ;;  %559 = vadd.xlane.f32.xlu1 %v558_v42  ;;  %v1465_v40 = vlaneseq }
 0x10d   : > { %601 = vadd.xlane.f32.xlu2 %v600_v35 }
 0x10f   : > { %607 = vadd.xlane.f32.xlu0 %v606_v9  ;;  %562 = vadd.xlane.f32.xlu1 %v561_v47 }
 0x115   : > { %604 = vadd.xlane.f32.xlu2 %v603_v34 }
 0x117   : > { %610 = vadd.xlane.f32.xlu0 %v609_v57  ;;  %613 = vadd.xlane.f32.xlu1 %v612_v52 }
 0x11d   : > { %565 = vadd.xlane.f32.xlu2 %v564_v54 }
 0x132   : > { %v521_v8 = vpop.xlane.xlu0 %520 }
 0x133   : > { %v1660_v31 = vmul.f32 -1.442695, %v521_v8 }
 0x134   : > { %v527_v11 = vpop.xlane.xlu1 %526 }
 0x135   : > { %1748 = vpow2.f32 %v1660_v31  ;;  %v1662_v46 = vmul.f32 -1.442695, %v527_v11 }
 0x137   : > { %1750 = vpow2.f32 %v1662_v46 }
 0x13a   : > { %v524_v61 = vpop.xlane.xlu0 %523 }
 0x13b   : > { %v1749_v56 = vpop.eup %1748  ;;  %v1661_v12 = vmul.f32 -1.442695, %v524_v61 }
 0x13c   : > { %v2316_v60 = vadd.f32 1.0, %v1749_v56  ;;  %v530_v62 = vpop.xlane.xlu1 %529 }
 0x13d   : > { %v1751_v1 = vpop.eup %1750  ;;  %1752 = vpow2.f32 %v1661_v12  ;;  %v1663_v63 = vmul.f32 -1.442695, %v530_v62 }
 0x13e   : > { %1754 = vrcp.f32 %v2316_v60  ;;  %v2319_v43 = vadd.f32 1.0, %v1751_v1  ;;  %v754_v30 = vand.u32 2147483648, %v2316_v60  ;;  %vm748_vm10 = vweird.f32 %v2316_v60 }
 0x13f   : > { %1756 = vpow2.f32 %v1663_v63  ;;  %v752_v41 = vand.u32 2147483647, %v2316_v60 }
 0x140   : > { %1758 = vrcp.f32 %v2319_v43  ;;  %v755_v24 = vor.u32 1.1754944e-38, %v754_v30  ;;  %v784_v52 = vand.u32 2147483648, %v2319_v43  ;;  %v782_v54 = vand.u32 2147483647, %v2319_v43 }
 0x141   : > { %vm753_vm15 = vcmp.eq.f32.partialorder %v752_v41, 8.507059e+37 }
 0x142   : > { %v785_v63 = vor.u32 1.1754944e-38, %v784_v52 }
 0x143   : > { %v1753_v0 = vpop.eup %1752 }
 0x144   : > { %v1755_v48 = vpop.eup %1754  ;;  %v2322_v58 = vadd.f32 1.0, %v1753_v0 }
 0x145   : > { %v1757_v15 = vpop.eup %1756  ;;  %v744_v3 = vmul.f32 %v1755_v48, %v2316_v60  ;;  %vm749_vm9 = vweird.f32 %v1755_v48 }
 0x146   : > { %1760 = vrcp.f32 %v2322_v58  ;;  %v2326_v14 = vpop.eup %1758  ;;  %v2328_v17 = vadd.f32 1.0, %v1757_v15  ;;  %v769_v35 = vand.u32 2147483648, %v2322_v58  ;;  %vm2345_vm11 = vmor %vm748_vm10, %vm749_vm9  ;;  %vm763_vm14 = vweird.f32 %v2322_v58 }
 0x147   : > { %v745_v2 = vsub.f32 1.0, %v744_v3  ;;  %v774_v21 = vmul.f32 %v2326_v14, %v2319_v43  ;;  %vm779_vm12 = vweird.f32 %v2326_v14  ;;  %v767_v55 = vand.u32 2147483647, %v2322_v58 }
 0x148   : > { %v569_v20 = vpop.xlane.xlu2 %568  ;;  %1762 = vrcp.f32 %v2328_v17  ;;  %vm778_vm9 = vweird.f32 %v2319_v43  ;;  %v770_v62 = vor.u32 1.1754944e-38, %v769_v35  ;;  %v797_v1 = vand.u32 2147483647, %v2328_v17 }
 0x149   : > { %v1676_v49 = vmul.f32 -1.442695, %v569_v20  ;;  %v746_v53 = vmul.f32 %v1755_v48, %v745_v2  ;;  %v775_v25 = vsub.f32 1.0, %v774_v21  ;;  %v799_v43 = vand.u32 2147483648, %v2328_v17 }
 0x14a   : > { %v575_v22 = vpop.xlane.xlu0 %574  ;;  %v578_v59 = vpop.xlane.xlu1 %577 }
 0x14b   : > { %1764 = vpow2.f32 %v1676_v49  ;;  %v1678_v27 = vmul.f32 -1.442695, %v575_v22  ;;  %v1679_v28 = vmul.f32 -1.442695, %v578_v59  ;;  %v747_v13 = vadd.f32 %v1755_v48, %v746_v53 }
 0x14c   : > { %v1761_v29 = vpop.eup %1760  ;;  %v776_v36 = vmul.f32 %v2326_v14, %v775_v25  ;;  %v800_v25 = vor.u32 1.1754944e-38, %v799_v43 }
 0x14d   : > { %v759_v16 = vmul.f32 %v1761_v29, %v2322_v58  ;;  %1766 = vpow2.f32 %v1678_v27  ;;  %vm764_vm13 = vweird.f32 %v1761_v29  ;;  %v751_v18 = vsel %vm2345_vm11, %v1755_v48, %v747_v13  ;;  %vm2370_vm11 = vmor %vm778_vm9, %vm779_vm12 }
 0x14e   : > { %1768 = vpow2.f32 %v1679_v28  ;;  %v2335_v23 = vpop.eup %1762  ;;  %v777_v32 = vadd.f32 %v2326_v14, %v776_v36  ;;  %vm2360_vm10 = vmor %vm763_vm14, %vm764_vm13  ;;  %v2366_v11 = vsel %vm753_vm15, %v755_v24, %v751_v18  ;;  %vm768_vm12 = vcmp.eq.f32.partialorder %v767_v55, 8.507059e+37 }
 0x14f   : > { %v760_v39 = vsub.f32 1.0, %v759_v16  ;;  %v789_v44 = vmul.f32 %v2335_v23, %v2328_v17  ;;  %v2386_v48 = vand.u32 127, %v1465_v40  ;;  %v1223_v58 = vmul.f32 %v2366_v11, %v2057_v4 }
 0x150   : > { %v572_v42 = vpop.xlane.xlu2 %571  ;;  %v781_v60 = vsel %vm2370_vm11, %v2326_v14, %v777_v32  ;;  %vm783_vm13 = vcmp.eq.f32.partialorder %v782_v54, 8.507059e+37  ;;  %vm794_vm14 = vweird.f32 %v2335_v23  ;;  %vm793_vm15 = vweird.f32 %v2328_v17 }
 0x151   : > { %v1765_v19 = vpop.eup %1764  ;;  %v1677_v45 = vmul.f32 -1.442695, %v572_v42  ;;  %v761_v33 = vmul.f32 %v1761_v29, %v760_v39  ;;  %v790_v51 = vsub.f32 1.0, %v789_v44  ;;  %v2392_v2 = vsel %vm783_vm13, %v785_v63, %v781_v60 }
 0x152   : > { %v2343_v9 = vadd.f32 1.0, %v1765_v19  ;;  %v2400_v53 = vadd.s32 4294967288, %v2386_v48  ;;  %vm2403_vm9 = vcmp.eq.f32.partialorder %v797_v1, 8.507059e+37  ;;  %v536_v22 = vpop.xlane.xlu0 %535  ;;  %v1255_v16 = vsel %vm221_vm0, %v1223_v58, 0.0  ;;  %v581_v36 = vpop.xlane.xlu1 %580 }
 0x153   : > { %v1767_v50 = vpop.eup %1766  ;;  %1770 = vpow2.f32 %v1677_v45  ;;  %v762_v34 = vadd.f32 %v1761_v29, %v761_v33  ;;  %v791_v56 = vmul.f32 %v2335_v23, %v790_v51  ;;  %v2414_v17 = vmul.f32 %v2392_v2, %v2063_v6 }
 0x154   : > { %v1769_v57 = vpop.eup %1768  ;;  %1772 = vrcp.f32 %v2343_v9  ;;  %v2364_v31 = vadd.f32 1.0, %v1767_v50  ;;  %v992_v30 = vand.u32 2147483647, %v2343_v9  ;;  %vm988_vm11 = vweird.f32 %v2343_v9 }
 0x155   : > { %v766_v61 = vsel %vm2360_vm10, %v1761_v29, %v762_v34  ;;  %v2377_v12 = vadd.f32 1.0, %v1769_v57  ;;  %v792_v21 = vadd.f32 %v2335_v23, %v791_v56  ;;  %vm2418_vm10 = vmor %vm793_vm15, %vm794_vm14  ;;  %v994_v39 = vand.u32 2147483648, %v2343_v9 }
 0x156   : > { %1774 = vrcp.f32 %v2364_v31  ;;  %v2390_v15 = vsel %vm768_vm12, %v770_v62, %v766_v61  ;;  %v1665_v41 = vmul.f32 -1.442695, %v536_v22  ;;  %v1022_v44 = vand.u32 2147483647, %v2364_v31 }
 0x157   : > { %1776 = vrcp.f32 %v2377_v12  ;;  %v1224_v59 = vmul.f32 %v2390_v15, %v2060_v5  ;;  %v796_v40 = vsel %vm2418_vm10, %v2335_v23, %v792_v21  ;;  %v2434_v45 = vmul.f32 -1.442695, %v581_v36 }
 0x158   : > { %v533_v3 = vpop.xlane.xlu2 %532  ;;  %vm2436_vm13 = vcmp.eq.f32.partialorder %v992_v30, 8.507059e+37  ;;  %v2442_v23 = vsel %vm2403_vm9, %v800_v25, %v796_v40  ;;  %v995_v18 = vor.u32 1.1754944e-38, %v994_v39  ;;  %vm1018_vm15 = vweird.f32 %v2364_v31 }
 0x159   : > { %v1771_v0 = vpop.eup %1770  ;;  %v1664_v27 = vmul.f32 -1.442695, %v533_v3  ;;  %v1256_v19 = vsel %vm223_vm1, %v1224_v59, 0.0  ;;  %v1024_v32 = vand.u32 2147483648, %v2364_v31  ;;  %vm2457_vm9 = vcmp.eq.f32.partialorder %v1022_v44, 8.507059e+37 }
 0x15a   : > { %v1773_v14 = vpop.eup %1772  ;;  %v2394_v20 = vadd.f32 1.0, %v1771_v0  ;;  %v2455_v55 = vadd.f32 %v1256_v19, %v1255_v16  ;;  %vm1470_vm10 = vcmask 130112   ;;  %vm1033_vm6 = vweird.f32 %v2377_v12  ;;  %v542_v54 = vpop.xlane.xlu1 %541 }
 0x15b   : > { %v984_v49 = vmul.f32 %v1773_v14, %v2343_v9  ;;  %vm989_vm12 = vweird.f32 %v1773_v14  ;;  %v1226_v9 = vmul.f32 %v2442_v23, %v2066_v7  ;;  %v1025_v0 = vor.u32 1.1754944e-38, %v1024_v32 }
 0x15c   : > { %1778 = vrcp.f32 %v2394_v20  ;;  %v1775_v28 = vpop.eup %1774  ;;  %vm2446_vm14 = vmor %vm988_vm11, %vm989_vm12  ;;  %vm1003_vm12 = vweird.f32 %v2394_v20  ;;  %v1007_v56 = vand.u32 2147483647, %v2394_v20  ;;  %v1009_v60 = vand.u32 2147483648, %v2394_v20 }
 0x15d   : > { %v985_v29 = vsub.f32 1.0, %v984_v49  ;;  %v2422_v5 = vpop.eup %1776  ;;  %v1014_v42 = vmul.f32 %v1775_v28, %v2364_v31  ;;  %1780 = vpow2.f32 %v1664_v27  ;;  %vm1019_vm11 = vweird.f32 %v1775_v28 }
 0x15e   : > { %v1029_v24 = vmul.f32 %v2422_v5, %v2377_v12  ;;  %vm1020_vm7 = vmor %vm1018_vm15, %vm1019_vm11  ;;  %v1037_v21 = vand.u32 2147483647, %v2377_v12  ;;  %v1039_v49 = vand.u32 2147483648, %v2377_v12  ;;  %vm1008_vm15 = vcmp.eq.f32.partialorder %v1007_v56, 8.507059e+37 }
 0x15f   : > { %v986_v6 = vmul.f32 %v1773_v14, %v985_v29  ;;  %v1015_v47 = vsub.f32 1.0, %v1014_v42  ;;  %v1010_v25 = vor.u32 1.1754944e-38, %v1009_v60  ;;  %v1265_v12 = vsel %vm223_vm1, %v1226_v9, 0.0 }
 0x160   : > { %v1030_v34 = vsub.f32 1.0, %v1029_v24  ;;  %v584_v3 = vpop.xlane.xlu2 %583  ;;  %v1040_v29 = vor.u32 1.1754944e-38, %v1039_v49 }
 0x161   : > { %v987_v33 = vadd.f32 %v1773_v14, %v986_v6  ;;  %v1016_v8 = vmul.f32 %v1775_v28, %v1015_v47  ;;  %v1681_v13 = vmul.f32 -1.442695, %v584_v3 }
 0x162   : > { %v1779_v51 = vpop.eup %1778  ;;  %v1031_v46 = vmul.f32 %v2422_v5, %v1030_v34 }
 0x163   : > { %v991_v57 = vsel %vm2446_vm14, %v1773_v14, %v987_v33  ;;  %v999_v52 = vmul.f32 %v1779_v51, %v2394_v20  ;;  %v1781_v62 = vpop.eup %1780  ;;  %v1017_v63 = vadd.f32 %v1775_v28, %v1016_v8  ;;  %vm1034_vm14 = vweird.f32 %v2422_v5  ;;  %v539_v20 = vpop.xlane.xlu0 %538 }
 0x164   : > { %v996_v1 = vsel %vm2436_vm13, %v995_v18, %v991_v57  ;;  %v1032_v43 = vadd.f32 %v2422_v5, %v1031_v46  ;;  %vm1004_vm8 = vweird.f32 %v1779_v51  ;;  %v2473_v58 = vadd.f32 1.0, %v1781_v62  ;;  %vm2484_vm13 = vmor %vm1033_vm6, %vm1034_vm14 }
 0x165   : > { %v1000_v61 = vsub.f32 1.0, %v999_v52  ;;  %v1021_v14 = vsel %vm1020_vm7, %v1775_v28, %v1017_v63  ;;  %v1239_v4 = vmul.f32 %v996_v1, %v2137_v10  ;;  %vm1005_vm7 = vmor %vm1003_vm12, %vm1004_vm8  ;;  %v1493_v27 = vperm.slane %v996_v1, %v2386_v48 }
 0x166   : > { %v1026_v59 = vsel %vm2457_vm9, %v1025_v0, %v1021_v14  ;;  %1782 = vrcp.f32 %v2473_v58  ;;  %v1036_v10 = vsel %vm2484_vm13, %v2422_v5, %v1032_v43  ;;  %vm1038_vm6 = vcmp.eq.f32.partialorder %v1037_v21, 8.507059e+37 }
 0x167   : > { %v1001_v7 = vmul.f32 %v1779_v51, %v1000_v61  ;;  %1784 = vpow2.f32 %v1665_v41  ;;  %v1241_v16 = vmul.f32 %v1026_v59, %v2146_v37  ;;  %v1327_v36 = vsel %vm221_vm0, %v1239_v4, 0.0 }
 0x168   : > { %v1041_v6 = vsel %vm1038_vm6, %v1040_v29, %v1036_v10  ;;  %v1496_v5 = vperm.slane %v1026_v59, %v2386_v48  ;;  %1786 = vpow2.f32 %v1681_v13  ;;  %v1666_v24 = vmul.f32 -1.442695, %v539_v20  ;;  %v587_v32 = vpop.xlane.xlu2 %586 }
 0x169   : > { %v1002_v22 = vadd.f32 %v1779_v51, %v1001_v7  ;;  %v1242_v42 = vmul.f32 %v1041_v6, %v2149_v38  ;;  %v1497_v44 = vperm.slane %v1041_v6, %v2400_v53  ;;  %1788 = vpow2.f32 %v2434_v45 }
 0x16a   : > { %v1258_v33 = vrot.slane %v2455_v55, 4  ;;  %v1336_v35 = vsel %vm221_vm0, %v1241_v16, 0.0  ;;  %1790 = vpow2.f32 %v1666_v24  ;;  %v1667_v1 = vmul.f32 -1.442695, %v542_v54 }
 0x16b   : > { %v1006_v28 = vsel %vm1005_vm7, %v1779_v51, %v1002_v22  ;;  %v1337_v38 = vsel %vm223_vm1, %v1242_v42, 0.0  ;;  %v1264_v51 = vsel %vm221_vm0, %v2414_v17, 0.0  ;;  %v1498_v45 = vsel %vm1470_vm10, %v1497_v44, %v1496_v5 }
 0x16c   : > { %v1011_v30 = vsel %vm1008_vm15, %v1010_v25, %v1006_v28  ;;  %v2502_v41 = vpop.eup %1782  ;;  %v2516_v18 = vadd.f32 %v1337_v38, %v1336_v35  ;;  %v1266_v34 = vadd.f32 %v1265_v12, %v1264_v51  ;;  %v1259_v8 = vadd.f32 %v1258_v33, %v2455_v55 }
 0x16d   : > { %v1240_v39 = vmul.f32 %v1011_v30, %v2140_v26  ;;  %v1494_v40 = vperm.slane %v1011_v30, %v2400_v53  ;;  %v1785_v47 = vpop.eup %1784  ;;  %v804_v50 = vmul.f32 %v2502_v41, %v2473_v58  ;;  %v1682_v17 = vmul.f32 -1.442695, %v587_v32 }
 0x16e   : > { %v716_v52 = vadd.f32 1.0, %v1785_v47  ;;  %v1787_v9 = vpop.eup %1786  ;;  %v1267_v60 = vrot.slane %v1266_v34, 4  ;;  %v1260_v63 = vrot.slane %v1259_v8, 2  ;;  %v812_v3 = vand.u32 2147483647, %v2473_v58 }
 0x16f   : > { %v1328_v37 = vsel %vm223_vm1, %v1240_v39, 0.0  ;;  %v1495_v19 = vsel %vm1470_vm10, %v1494_v40, %v1493_v27  ;;  %v1789_v46 = vpop.eup %1788  ;;  %v805_v61 = vsub.f32 1.0, %v804_v50  ;;  %v2523_v56 = vadd.f32 1.0, %v1787_v9 }
 0x170   : > { %v2507_v26 = vadd.f32 %v1328_v37, %v1327_v36  ;;  %v2520_v57 = vsel %vm387_vm2, %v1498_v45, %v1495_v19  ;;  %1792 = vrcp.f32 %v716_v52  ;;  %v2525_v62 = vadd.f32 1.0, %v1789_v46  ;;  %v1791_v43 = vpop.eup %1790  ;;  %v1876_v46 = vld [vmem:[%s2054_s10 + $0x28] sm:$0x3] }
 0x171   : > { %1794 = vrcp.f32 %v2523_v56  ;;  %v806_v7 = vmul.f32 %v2502_v41, %v805_v61  ;;  %v2530_v0 = vadd.f32 %v1267_v60, %v1266_v34  ;;  %v1467_v14 = vperm.slane %v2366_v11, %v2386_v48  ;;  %v590_v60 = vpop.xlane.xlu0 %589 }
 0x172   : > { %1796 = vpow2.f32 %v1682_v17  ;;  %v1472_v21 = vperm.slane %v2392_v2, %v2386_v48  ;;  %v814_v49 = vand.u32 2147483648, %v2473_v58  ;;  %v2538_v22 = vadd.f32 %v1260_v63, %v1259_v8 }
 0x173   : > { %1798 = vrcp.f32 %v2525_v62  ;;  %v1473_v59 = vperm.slane %v2442_v23, %v2400_v53  ;;  %vm809_vm8 = vweird.f32 %v2502_v41  ;;  %v827_v31 = vand.u32 2147483647, %v716_v52 }
 0x174   : > { %1800 = vpow2.f32 %v1667_v1  ;;  %v807_v12 = vadd.f32 %v2502_v41, %v806_v7  ;;  %v829_v27 = vand.u32 2147483648, %v716_v52  ;;  %v2544_v28 = vadd.f32 1.0, %v1791_v43 }
 0x175   : > { %v1269_v30 = vrot.slane %v2530_v0, 2  ;;  %vm808_vm9 = vweird.f32 %v2473_v58  ;;  %vm2548_vm11 = vcmp.eq.f32.partialorder %v812_v3, 8.507059e+37  ;;  %v815_v20 = vor.u32 1.1754944e-38, %v814_v49  ;;  %v1878_v3 = vld [vmem:[%s2054_s10 + $0xa8] sm:$0x3] }
 0x176   : > { %v1793_v55 = vpop.eup %1792  ;;  %1802 = vrcp.f32 %v2544_v28  ;;  %vm2556_vm14 = vmor %vm808_vm9, %vm809_vm8  ;;  %vm823_vm13 = vweird.f32 %v716_v52  ;;  %vm2560_vm7 = vcmp.eq.f32.partialorder %v827_v31, 8.507059e+37  ;;  %v830_v37 = vor.u32 1.1754944e-38, %v829_v27  ;;  %v548_v31 = vpop.xlane.xlu2 %547  ;;  %v1879_v27 = vld [vmem:[%s2054_s10 + $0xa0] sm:$0xff] }
 0x177   : > { %v819_v4 = vmul.f32 %v1793_v55, %v716_v52  ;;  %v1795_v25 = vpop.eup %1794  ;;  %vm824_vm12 = vweird.f32 %v1793_v55  ;;  %v811_v42 = vsel %vm2556_vm14, %v2502_v41, %v807_v12  ;;  %v1069_v19 = vand.u32 2147483648, %v2523_v56 }
 0x178   : > { %v1797_v29 = vpop.eup %1796  ;;  %v1059_v23 = vmul.f32 %v1795_v25, %v2523_v56  ;;  %vm825_vm15 = vmor %vm823_vm13, %vm824_vm12  ;;  %vm1064_vm6 = vweird.f32 %v1795_v25  ;;  %v1067_v33 = vand.u32 2147483647, %v2523_v56  ;;  %vm1063_vm8 = vweird.f32 %v2523_v56 }
 0x179   : > { %v820_v10 = vsub.f32 1.0, %v819_v4  ;;  %v1799_v13 = vpop.eup %1798  ;;  %v2571_v47 = vadd.f32 1.0, %v1797_v29  ;;  %v1054_v32 = vand.u32 2147483648, %v2525_v62  ;;  %vm1065_vm9 = vmor %vm1063_vm8, %vm1064_vm6  ;;  %v1070_v52 = vor.u32 1.1754944e-38, %v1069_v19 }
 0x17a   : > { %v1801_v39 = vpop.eup %1800  ;;  %v1060_v6 = vsub.f32 1.0, %v1059_v23  ;;  %v1044_v5 = vmul.f32 %v1799_v13, %v2525_v62  ;;  %vm1049_vm12 = vweird.f32 %v1799_v13  ;;  %v1052_v54 = vand.u32 2147483647, %v2525_v62 }
 0x17b   : > { %v821_v36 = vmul.f32 %v1793_v55, %v820_v10  ;;  %v2573_v51 = vadd.f32 1.0, %v1801_v39  ;;  %v2586_v9 = vsel %vm2548_vm11, %v815_v20, %v811_v42  ;;  %vm1068_vm14 = vcmp.eq.f32.partialorder %v1067_v33, 8.507059e+37 }
 0x17c   : > { %v1061_v24 = vmul.f32 %v1795_v25, %v1060_v6  ;;  %v1045_v35 = vsub.f32 1.0, %v1044_v5  ;;  %v2580_v34 = vpop.eup %1802  ;;  %vm1048_vm13 = vweird.f32 %v2525_v62  ;;  %v1469_v1 = vperm.slane %v2390_v15, %v2400_v53 }
 0x17d   : > { %v822_v44 = vadd.f32 %v1793_v55, %v821_v36  ;;  %1804 = vrcp.f32 %v2573_v51  ;;  %v1474_v63 = vsel %vm1470_vm10, %v1473_v59, %v1472_v21  ;;  %vm1050_vm11 = vmor %vm1048_vm13, %vm1049_vm12  ;;  %v1055_v43 = vor.u32 1.1754944e-38, %v1054_v32 }
 0x17e   : > { %v1062_v50 = vadd.f32 %v1795_v25, %v1061_v24  ;;  %v1046_v45 = vmul.f32 %v1799_v13, %v1045_v35  ;;  %1806 = vrcp.f32 %v2571_v47  ;;  %v834_v7 = vmul.f32 %v2580_v34, %v2544_v28 }
 0x17f   : > { %v826_v38 = vsel %vm825_vm15, %v1793_v55, %v822_v44  ;;  %v1877_v55 = vld [vmem:[%s2054_s10 + $0x20] sm:$0xff]  ;;  %v1262_v15 = vrot.slane %v2538_v22, 1  ;;  %v2606_v2 = vadd.f32 %v1269_v30, %v2530_v0  ;;  %v1683_v59 = vmul.f32 -1.442695, %v590_v60 }
 0x180   : > { %v2577_v41 = vsel %vm2560_vm7, %v830_v37, %v826_v38  ;;  %v1066_v8 = vsel %vm1065_vm9, %v1795_v25, %v1062_v50  ;;  %v1047_v17 = vadd.f32 %v1799_v13, %v1046_v45  ;;  %v1227_v62 = vmul.f32 %v1877_v55, %v2586_v9  ;;  %v545_v37 = vpop.xlane.xlu1 %544 }
 0x181   : > { %v1228_v61 = vmul.f32 %v1876_v46, %v2577_v41  ;;  %v1071_v56 = vsel %vm1068_vm14, %v1070_v52, %v1066_v8  ;;  %vm1053_vm7 = vcmp.eq.f32.partialorder %v1052_v54, 8.507059e+37  ;;  %v1330_v23 = vrot.slane %v2507_v26, 4 }
 0x182   : > { %v1244_v49 = vmul.f32 %v1878_v3, %v1071_v56  ;;  %v1051_v4 = vsel %vm1050_vm11, %v1799_v13, %v1047_v17  ;;  %v1500_v10 = vperm.slane %v1071_v56, %v2400_v53  ;;  %v1339_v13 = vrot.slane %v2516_v18, 4 }
 0x183   : > { %v1056_v21 = vsel %vm1053_vm7, %v1055_v43, %v1051_v4  ;;  %v2608_v25 = vpop.eup %1804  ;;  %v1274_v12 = vsel %vm223_vm1, %v1228_v61, 0.0  ;;  %v835_v20 = vsub.f32 1.0, %v834_v7  ;;  %v1273_v36 = vsel %vm221_vm0, %v1227_v62, 0.0 }
 0x184   : > { %v1243_v29 = vmul.f32 %v1879_v27, %v1056_v21  ;;  %v1499_v16 = vperm.slane %v1056_v21, %v2386_v48  ;;  %v849_v0 = vmul.f32 %v2608_v25, %v2573_v51  ;;  %v2618_v30 = vpop.eup %1806  ;;  %v1346_v39 = vsel %vm223_vm1, %v1244_v49, 0.0 }
 0x185   : > { %v1275_v6 = vadd.f32 %v1274_v12, %v1273_v36  ;;  %1808 = vpow2.f32 %v1683_v59  ;;  %v1669_v19 = vmul.f32 -1.442695, %v548_v31  ;;  %v1471_v24 = vsel %vm1470_vm10, %v1469_v1, %v1467_v14 }
 0x186   : > { %v1345_v40 = vsel %vm221_vm0, %v1243_v29, 0.0  ;;  %v1501_v58 = vsel %vm1470_vm10, %v1500_v10, %v1499_v16  ;;  %v850_v44 = vsub.f32 1.0, %v849_v0  ;;  %v836_v33 = vmul.f32 %v2580_v34, %v835_v20  ;;  %v1880_v20 = vld [vmem:[%s2054_s10 + $0x38] sm:$0x3] }
 0x187   : > { %v1347_v5 = vadd.f32 %v1346_v39, %v1345_v40  ;;  %v2626_v42 = vsel %vm389_vm3, %v1501_v58, %v2520_v57  ;;  %v1074_v35 = vmul.f32 %v2618_v30, %v2571_v47  ;;  %v1331_v50 = vadd.f32 %v1330_v23, %v2507_v26 }
 0x188   : > { %v851_v38 = vmul.f32 %v2608_v25, %v850_v44  ;;  %v2638_v57 = vadd.f32 %v1262_v15, %v2538_v22  ;;  %v1271_v45 = vrot.slane %v2606_v2, 1  ;;  %v2642_v32 = vsel %vm387_vm2, %v1474_v63, %v1471_v24  ;;  %v593_v22 = vpop.xlane.xlu0 %592  ;;  %v596_v21 = vpop.xlane.xlu1 %595 }
 0x189   : > { %v1340_v11 = vadd.f32 %v1339_v13, %v2516_v18  ;;  %v1276_v14 = vrot.slane %v1275_v6, 4  ;;  %vm854_vm15 = vweird.f32 %v2608_v25  ;;  %vm839_vm6 = vweird.f32 %v2580_v34  ;;  %v551_v18 = vpop.xlane.xlu2 %550 }
 0x18a   : > { %v852_v52 = vadd.f32 %v2608_v25, %v851_v38  ;;  %v857_v54 = vand.u32 2147483647, %v2573_v51  ;;  %v859_v26 = vand.u32 2147483648, %v2573_v51  ;;  %1810 = vpow2.f32 %v1669_v19 }
 0x18b   : > { %v837_v8 = vadd.f32 %v2580_v34, %v836_v33  ;;  %v1075_v17 = vsub.f32 1.0, %v1074_v35  ;;  %vm853_vm8 = vweird.f32 %v2573_v51  ;;  %v1668_v46 = vmul.f32 -1.442695, %v545_v37  ;;  %v1809_v61 = vpop.eup %1808 }
 0x18c   : > { %v1332_v56 = vrot.slane %v1331_v50, 2  ;;  %vm838_vm9 = vweird.f32 %v2544_v28  ;;  %v842_v60 = vand.u32 2147483647, %v2544_v28  ;;  %v844_v1 = vand.u32 2147483648, %v2544_v28  ;;  %vm2657_vm12 = vmor %vm853_vm8, %vm854_vm15 }
 0x18d   : > { %v1277_v43 = vadd.f32 %v1276_v14, %v1275_v6  ;;  %v856_v51 = vsel %vm2657_vm12, %v2608_v25, %v852_v52  ;;  %v2664_v7 = vadd.f32 1.0, %v1809_v61  ;;  %v1684_v55 = vmul.f32 -1.442695, %v593_v22  ;;  %vm2668_vm14 = vmor %vm838_vm9, %vm839_vm6 }
 0x18e   : > { %vm858_vm13 = vcmp.eq.f32.partialorder %v857_v54, 8.507059e+37  ;;  %v860_v28 = vor.u32 1.1754944e-38, %v859_v26  ;;  %1812 = vpow2.f32 %v1668_v46  ;;  %v1670_v3 = vmul.f32 -1.442695, %v551_v18 }
 0x18f   : > { %v1348_v49 = vrot.slane %v1347_v5, 4  ;;  %v841_v4 = vsel %vm2668_vm14, %v2580_v34, %v837_v8  ;;  %v1076_v15 = vmul.f32 %v2618_v30, %v1075_v17  ;;  %1814 = vrcp.f32 %v2664_v7 }
 0x190   : > { %v1811_v59 = vpop.eup %1810  ;;  %v1333_v31 = vadd.f32 %v1332_v56, %v1331_v50  ;;  %v1341_v25 = vrot.slane %v1340_v11, 2  ;;  %v845_v12 = vor.u32 1.1754944e-38, %v844_v1  ;;  %v2677_v10 = vsel %vm858_vm13, %v860_v28, %v856_v51  ;;  %v554_v8 = vpop.xlane.xlu0 %553 }
 0x191   : > { %vm843_vm11 = vcmp.eq.f32.partialorder %v842_v60, 8.507059e+37  ;;  %vm1079_vm7 = vweird.f32 %v2618_v30  ;;  %v2680_v27 = vadd.f32 1.0, %v1811_v59  ;;  %1816 = vpow2.f32 %v1684_v55  ;;  %v599_v38 = vpop.xlane.xlu1 %598 }
 0x192   : > { %v1278_v29 = vrot.slane %v1277_v43, 2  ;;  %v2682_v34 = vsel %vm843_vm11, %v845_v12, %v841_v4  ;;  %1818 = vpow2.f32 %v1670_v3  ;;  %v1685_v16 = vmul.f32 -1.442695, %v596_v21  ;;  %v602_v3 = vpop.xlane.xlu2 %601 }
 0x193   : > { %v1349_v23 = vadd.f32 %v1348_v49, %v1347_v5  ;;  %v1077_v13 = vadd.f32 %v2618_v30, %v1076_v15  ;;  %v1230_v0 = vmul.f32 %v1880_v20, %v2677_v10  ;;  %1820 = vrcp.f32 %v2680_v27  ;;  %v1881_v5 = vld [vmem:[%s2054_s10 + $0x30] sm:$0xff] }
 0x194   : > { %v1813_v36 = vpop.eup %1812  ;;  %v1334_v39 = vrot.slane %v1333_v31, 1  ;;  %v1342_v40 = vadd.f32 %v1341_v25, %v1340_v11  ;;  %vm1078_vm15 = vweird.f32 %v2571_v47  ;;  %v1084_v58 = vand.u32 2147483648, %v2571_v47  ;;  %v1882_v15 = vld [vmem:[%s2054_s10 + $0xb0] sm:$0xff] }
 0x195   : > { %v2690_v6 = vpop.eup %1814  ;;  %v1476_v44 = vperm.slane %v2577_v41, %v2400_v53  ;;  %v1229_v37 = vmul.f32 %v1881_v5, %v2682_v34  ;;  %v1082_v19 = vand.u32 2147483647, %v2571_v47  ;;  %v2697_v24 = vadd.f32 1.0, %v1813_v36  ;;  %vm2703_vm6 = vmor %vm1078_vm15, %vm1079_vm7 }
 0x196   : > { %v1475_v33 = vperm.slane %v2586_v9, %v2386_v48  ;;  %v1279_v35 = vadd.f32 %v1278_v29, %v1277_v43  ;;  %v1089_v41 = vmul.f32 %v2690_v6, %v2664_v7  ;;  %1822 = vpow2.f32 %v1685_v16 }
 0x197   : > { %v1817_v50 = vpop.eup %1816  ;;  %v1350_v11 = vrot.slane %v1349_v23, 2  ;;  %v1081_v47 = vsel %vm2703_vm6, %v2618_v30, %v1077_v13  ;;  %v1283_v14 = vsel %vm223_vm1, %v1230_v0, 0.0  ;;  %1824 = vrcp.f32 %v2697_v24 }
 0x198   : > { %v1819_v9 = vpop.eup %1818  ;;  %v2717_v52 = vadd.f32 %v1271_v45, %v2606_v2  ;;  %v1343_v54 = vrot.slane %v1342_v40, 1  ;;  %v1085_v26 = vor.u32 1.1754944e-38, %v1084_v58  ;;  %v2719_v22 = vadd.f32 1.0, %v1817_v50 }
 0x199   : > { %v2721_v17 = vpop.eup %1820  ;;  %v1477_v46 = vsel %vm1470_vm10, %v1476_v44, %v1475_v33  ;;  %v1282_v30 = vsel %vm221_vm0, %v1229_v37, 0.0  ;;  %vm1083_vm8 = vcmp.eq.f32.partialorder %v1082_v19, 8.507059e+37  ;;  %v1090_v18 = vsub.f32 1.0, %v1089_v41 }
 0x19a   : > { %v1280_v61 = vrot.slane %v1279_v35, 1  ;;  %v2725_v56 = vsel %vm1083_vm8, %v1085_v26, %v1081_v47  ;;  %v1284_v60 = vadd.f32 %v1283_v14, %v1282_v30  ;;  %v879_v2 = vmul.f32 %v2721_v17, %v2680_v27 }
 0x19b   : > { %v2729_v45 = vadd.f32 %v1334_v39, %v1333_v31  ;;  %v2731_v1 = vadd.f32 %v1350_v11, %v1349_v23  ;;  %1826 = vrcp.f32 %v2719_v22  ;;  %v1671_v63 = vmul.f32 -1.442695, %v554_v8 }
 0x19c   : > { %v1823_v43 = vpop.eup %1822  ;;  %v2734_v51 = vadd.f32 %v1343_v54, %v1342_v40  ;;  %v2738_v55 = vsel %vm389_vm3, %v1477_v46, %v2642_v32  ;;  %v880_v62 = vsub.f32 1.0, %v879_v2  ;;  %v2740_v28 = vadd.f32 1.0, %v1819_v9 }
 0x19d   : > { %v1825_v49 = vpop.eup %1824  ;;  %v1478_v4 = vperm.slane %v2682_v34, %v2386_v48  ;;  %v1245_v21 = vmul.f32 %v1882_v15, %v2725_v56  ;;  %v1502_v59 = vperm.slane %v2725_v56, %v2386_v48  ;;  %v1091_v31 = vmul.f32 %v2690_v6, %v1090_v18  ;;  %v1883_v15 = vld [vmem:[%s2054_s10 + $0xb8] sm:$0x3] }
 0x19e   : > { %v2749_v25 = vadd.f32 %v1280_v61, %v1279_v35  ;;  %v1285_v32 = vrot.slane %v1284_v60, 4  ;;  %v1479_v12 = vperm.slane %v2677_v10, %v2400_v53  ;;  %v864_v29 = vmul.f32 %v1825_v49, %v2697_v24 }
 0x19f   : > { %v1352_v16 = vrot.slane %v2731_v1, 1  ;;  %v2755_v23 = vadd.f32 1.0, %v1823_v43  ;;  %1828 = vpow2.f32 %v1671_v63  ;;  %v1687_v34 = vmul.f32 -1.442695, %v602_v3 }
 0x1a0   : > { %vm1093_vm9 = vweird.f32 %v2664_v7  ;;  %v881_v13 = vmul.f32 %v2721_v17, %v880_v62  ;;  %v865_v20 = vsub.f32 1.0, %v864_v29  ;;  %1830 = vrcp.f32 %v2740_v28  ;;  %v557_v29 = vpop.xlane.xlu0 %556 }
 0x1a1   : > { %v2760_v0 = vpop.eup %1826  ;;  %v1092_v36 = vadd.f32 %v2690_v6, %v1091_v31  ;;  %vm1094_vm12 = vweird.f32 %v2690_v6  ;;  %v1099_v10 = vand.u32 2147483648, %v2664_v7  ;;  %1832 = vrcp.f32 %v2755_v23 }
 0x1a2   : > { %v1286_v39 = vadd.f32 %v1285_v32, %v1284_v60  ;;  %v1097_v40 = vand.u32 2147483647, %v2664_v7  ;;  %v866_v58 = vmul.f32 %v1825_v49, %v865_v20  ;;  %vm869_vm14 = vweird.f32 %v1825_v49  ;;  %vm2772_vm11 = vmor %vm1093_vm9, %vm1094_vm12 }
 0x1a3   : > { %vm868_vm13 = vweird.f32 %v2697_v24  ;;  %v872_v44 = vand.u32 2147483647, %v2697_v24  ;;  %v874_v5 = vand.u32 2147483648, %v2697_v24  ;;  %1834 = vpow2.f32 %v1687_v34  ;;  %v1884_v34 = vld [vmem:[%s2054_s10 + $0x40] sm:$0xff] }
 0x1a4   : > { %v882_v19 = vadd.f32 %v2721_v17, %v881_v13  ;;  %vm884_vm7 = vweird.f32 %v2721_v17  ;;  %v867_v33 = vadd.f32 %v1825_v49, %v866_v58  ;;  %v1104_v35 = vmul.f32 %v2760_v0, %v2719_v22  ;;  %vm2788_vm15 = vmor %vm868_vm13, %vm869_vm14  ;;  %v1885_v58 = vld [vmem:[%s2054_s10 + $0x48] sm:$0x3] }
 0x1a5   : > { %v1829_v41 = vpop.eup %1828  ;;  %v1480_v50 = vsel %vm1470_vm10, %v1479_v12, %v1478_v4  ;;  %v1096_v7 = vsel %vm2772_vm11, %v2690_v6, %v1092_v36  ;;  %v1100_v11 = vor.u32 1.1754944e-38, %v1099_v10  ;;  %v889_v47 = vand.u32 2147483648, %v2680_v27 }
 0x1a6   : > { %v2792_v9 = vpop.eup %1830  ;;  %v1287_v54 = vrot.slane %v1286_v39, 2  ;;  %vm883_vm6 = vweird.f32 %v2680_v27  ;;  %v887_v26 = vand.u32 2147483647, %v2680_v27  ;;  %v871_v6 = vsel %vm2788_vm15, %v1825_v49, %v867_v33 }
 0x1a7   : > { %v2798_v8 = vpop.eup %1832  ;;  %vm1098_vm8 = vcmp.eq.f32.partialorder %v1097_v40, 8.507059e+37  ;;  %vm2802_vm9 = vmor %vm883_vm6, %vm884_vm7  ;;  %vm873_vm12 = vcmp.eq.f32.partialorder %v872_v44, 8.507059e+37  ;;  %v875_v46 = vor.u32 1.1754944e-38, %v874_v5  ;;  %v1686_v30 = vmul.f32 -1.442695, %v599_v38 }
 0x1a8   : > { %v1101_v18 = vsel %vm1098_vm8, %v1100_v11, %v1096_v7  ;;  %v886_v27 = vsel %vm2802_vm9, %v2721_v17, %v882_v19  ;;  %v1105_v61 = vsub.f32 1.0, %v1104_v35  ;;  %v1119_v60 = vmul.f32 %v2798_v8, %v2755_v23 }
 0x1a9   : > { %v1835_v2 = vpop.eup %1834  ;;  %v890_v63 = vor.u32 1.1754944e-38, %v889_v47  ;;  %v2811_v43 = vsel %vm873_vm12, %v875_v46, %v871_v6  ;;  %v894_v62 = vmul.f32 %v2792_v9, %v2740_v28  ;;  %v2815_v3 = vadd.f32 1.0, %v1829_v41 }
 0x1aa   : > { %v1354_v49 = vsel %vm221_vm0, %v1245_v21, 0.0  ;;  %v2818_v4 = vadd.f32 %v1287_v54, %v1286_v39  ;;  %v2822_v17 = vsel %vm391_vm4, %v1480_v50, %v2738_v55  ;;  %vm888_vm14 = vcmp.eq.f32.partialorder %v887_v26, 8.507059e+37 }
 0x1ab   : > { %v1246_v31 = vmul.f32 %v1883_v15, %v1101_v18  ;;  %v2825_v32 = vsel %vm888_vm14, %v890_v63, %v886_v27  ;;  %v1112_v12 = vand.u32 2147483647, %v2719_v22  ;;  %1836 = vpow2.f32 %v1686_v30  ;;  %v605_v27 = vpop.xlane.xlu2 %604 }
 0x1ac   : > { %v1231_v13 = vmul.f32 %v1884_v34, %v2811_v43  ;;  %v1106_v21 = vmul.f32 %v2760_v0, %v1105_v61  ;;  %v1120_v20 = vsub.f32 1.0, %v1119_v60  ;;  %1838 = vrcp.f32 %v2815_v3  ;;  %v608_v34 = vpop.xlane.xlu0 %607 }
 0x1ad   : > { %v2835_v55 = vadd.f32 %v1352_v16, %v2731_v1  ;;  %v1114_v36 = vand.u32 2147483648, %v2719_v22  ;;  %v895_v10 = vsub.f32 1.0, %v894_v62  ;;  %v2838_v39 = vadd.f32 1.0, %v1835_v2  ;;  %v560_v62 = vpop.xlane.xlu1 %559 }
 0x1ae   : > { %v1289_v40 = vrot.slane %v2818_v4, 1  ;;  %v1232_v44 = vmul.f32 %v1885_v58, %v2825_v32  ;;  %vm1108_vm13 = vweird.f32 %v2719_v22  ;;  %v1672_v5 = vmul.f32 -1.442695, %v557_v29 }
 0x1af   : > { %v1355_v37 = vsel %vm223_vm1, %v1246_v31, 0.0  ;;  %v1503_v19 = vperm.slane %v1101_v18, %v2400_v53  ;;  %vm2846_vm11 = vcmp.eq.f32.partialorder %v1112_v12, 8.507059e+37  ;;  %vm898_vm7 = vweird.f32 %v2740_v28 }
 0x1b0   : > { %v902_v16 = vand.u32 2147483647, %v2740_v28  ;;  %v1291_v33 = vsel %vm221_vm0, %v1231_v13, 0.0  ;;  %v1107_v35 = vadd.f32 %v2760_v0, %v1106_v21  ;;  %vm1109_vm15 = vweird.f32 %v2760_v0 }
 0x1b1   : > { %v1121_v38 = vmul.f32 %v2798_v8, %v1120_v20  ;;  %v1837_v41 = vpop.eup %1836  ;;  %v1115_v50 = vor.u32 1.1754944e-38, %v1114_v36  ;;  %v896_v7 = vmul.f32 %v2792_v9, %v895_v10  ;;  %v904_v11 = vand.u32 2147483648, %v2740_v28  ;;  %vm2875_vm8 = vmor %vm1108_vm13, %vm1109_vm15 }
 0x1b2   : > { %1840 = vrcp.f32 %v2838_v39  ;;  %v2859_v47 = vpop.eup %1838  ;;  %v1292_v14 = vsel %vm223_vm1, %v1232_v44, 0.0  ;;  %vm1123_vm6 = vweird.f32 %v2755_v23  ;;  %v1127_v54 = vand.u32 2147483647, %v2755_v23 }
 0x1b3   : > { %v1129_v26 = vand.u32 2147483648, %v2755_v23  ;;  %v2865_v6 = vadd.f32 %v1355_v37, %v1354_v49  ;;  %v1504_v24 = vsel %vm1470_vm10, %v1503_v19, %v1502_v59  ;;  %v1293_v46 = vadd.f32 %v1292_v14, %v1291_v33  ;;  %v1886_v33 = vld [vmem:[%s2054_s10 + $0xc0] sm:$0xff] }
 0x1b4   : > { %v909_v18 = vmul.f32 %v2859_v47, %v2815_v3  ;;  %v1111_v61 = vsel %vm2875_vm8, %v2760_v0, %v1107_v35  ;;  %vm2884_vm9 = vcmp.eq.f32.partialorder %v902_v16, 8.507059e+37  ;;  %v1122_v59 = vadd.f32 %v2798_v8, %v1121_v38 }
 0x1b5   : > { %vm1124_vm12 = vweird.f32 %v2798_v8  ;;  %v2890_v22 = vadd.f32 1.0, %v1837_v41  ;;  %v1482_v60 = vperm.slane %v2825_v32, %v2400_v53  ;;  %v897_v2 = vadd.f32 %v2792_v9, %v896_v7 }
 0x1b6   : > { %vm899_vm14 = vweird.f32 %v2792_v9  ;;  %v910_v63 = vsub.f32 1.0, %v909_v18  ;;  %v1481_v0 = vperm.slane %v2811_v43, %v2386_v48  ;;  %vm2898_vm13 = vcmp.eq.f32.partialorder %v1127_v54, 8.507059e+37  ;;  %vm2911_vm15 = vmor %vm1123_vm6, %vm1124_vm12  ;;  %v1887_v54 = vld [vmem:[%s2054_s10 + $0xc8] sm:$0x3] }
 0x1b7   : > { %v1130_v15 = vor.u32 1.1754944e-38, %v1129_v26  ;;  %1842 = vrcp.f32 %v2890_v22  ;;  %v1294_v12 = vrot.slane %v1293_v46, 4  ;;  %v2907_v32 = vsel %vm2846_vm11, %v1115_v50, %v1111_v61  ;;  %vm2918_vm8 = vmor %vm898_vm7, %vm899_vm14 }
 0x1b8   : > { %v2903_v31 = vpop.eup %1840  ;;  %v911_v43 = vmul.f32 %v2859_v47, %v910_v63  ;;  %1844 = vpow2.f32 %v1672_v5  ;;  %v1126_v21 = vsel %vm2911_vm15, %v2798_v8, %v1122_v59  ;;  %vm914_vm11 = vweird.f32 %v2859_v47  ;;  %v1888_v59 = vld [vmem:[%s2054_s10 + $0x50] sm:$0xff] }
 0x1b9   : > { %v1149_v23 = vmul.f32 %v2903_v31, %v2838_v39  ;;  %v1688_v20 = vmul.f32 -1.442695, %v605_v27  ;;  %v901_v36 = vsel %vm2918_vm8, %v2792_v9, %v897_v2  ;;  %v919_v10 = vand.u32 2147483648, %v2815_v3  ;;  %v563_v27 = vpop.xlane.xlu1 %562 }
 0x1ba   : > { %v912_v28 = vadd.f32 %v2859_v47, %v911_v43  ;;  %v1673_v58 = vmul.f32 -1.442695, %v560_v62  ;;  %vm913_vm7 = vweird.f32 %v2815_v3  ;;  %v917_v8 = vand.u32 2147483647, %v2815_v3 }
 0x1bb   : > { %1846 = vpow2.f32 %v1688_v20  ;;  %v1689_v44 = vmul.f32 -1.442695, %v608_v34  ;;  %v905_v5 = vor.u32 1.1754944e-38, %v904_v11  ;;  %v2937_v37 = vsel %vm2898_vm13, %v1130_v15, %v1126_v21  ;;  %vm2939_vm6 = vmor %vm913_vm7, %vm914_vm11 }
 0x1bc   : > { %v1150_v9 = vsub.f32 1.0, %v1149_v23  ;;  %1848 = vpow2.f32 %v1673_v58  ;;  %v2947_v16 = vsel %vm391_vm4, %v1504_v24, %v2626_v42  ;;  %v1483_v3 = vsel %vm1470_vm10, %v1482_v60, %v1481_v0  ;;  %v566_v42 = vpop.xlane.xlu2 %565 }
 0x1bd   : > { %v2943_v1 = vpop.eup %1842  ;;  %v1247_v35 = vmul.f32 %v1886_v33, %v2907_v32  ;;  %v916_v38 = vsel %vm2939_vm6, %v2859_v47, %v912_v28  ;;  %v1295_v50 = vadd.f32 %v1294_v12, %v1293_v46  ;;  %v2957_v7 = vsel %vm2884_vm9, %v905_v5, %v901_v36  ;;  %v1889_v12 = vld [vmem:[%s2054_s10 + $0x58] sm:$0x3] }
 0x1be   : > { %v1845_v41 = vpop.eup %1844  ;;  %v920_v11 = vor.u32 1.1754944e-38, %v919_v10  ;;  %1850 = vpow2.f32 %v1689_v44  ;;  %v1357_v14 = vrot.slane %v2865_v6, 4  ;;  %v1248_v26 = vmul.f32 %v1887_v54, %v2937_v37 }
 0x1bf   : > { %vm918_vm12 = vcmp.eq.f32.partialorder %v917_v8, 8.507059e+37  ;;  %v2962_v24 = vadd.f32 1.0, %v1845_v41  ;;  %v2966_v47 = vsel %vm393_vm5, %v1483_v3, %v2822_v17  ;;  %v1151_v30 = vmul.f32 %v2903_v31, %v1150_v9 }
 0x1c0   : > { %v2968_v46 = vsel %vm918_vm12, %v920_v11, %v916_v38  ;;  %v1134_v18 = vmul.f32 %v2943_v1, %v2890_v22  ;;  %v1505_v56 = vperm.slane %v2907_v32, %v2386_v48  ;;  %v1233_v60 = vmul.f32 %v1888_v59, %v2957_v7 }
 0x1c1   : > { %v1847_v61 = vpop.eup %1846  ;;  %1852 = vrcp.f32 %v2962_v24  ;;  %v1675_v17 = vmul.f32 -1.442695, %v566_v42  ;;  %v1296_v63 = vrot.slane %v1295_v50, 2  ;;  %v1363_v62 = vsel %vm221_vm0, %v1247_v35, 0.0  ;;  %v611_v42 = vpop.xlane.xlu0 %610 }
 0x1c2   : > { %v1849_v2 = vpop.eup %1848  ;;  %v1484_v0 = vperm.slane %v2957_v7, %v2386_v48  ;;  %v1157_v49 = vand.u32 2147483647, %v2838_v39  ;;  %v1364_v15 = vsel %vm223_vm1, %v1248_v26, 0.0  ;;  %v1234_v29 = vmul.f32 %v1889_v12, %v2968_v46  ;;  %v1892_v12 = vld [vmem:[%s2054_s10 + $0xd0] sm:$0xff] }
 0x1c3   : > { %vm1154_vm9 = vweird.f32 %v2903_v31  ;;  %v1674_v43 = vmul.f32 -1.442695, %v563_v27  ;;  %v1152_v13 = vadd.f32 %v2903_v31, %v1151_v30  ;;  %v1135_v21 = vsub.f32 1.0, %v1134_v18 }
 0x1c4   : > { %v1851_v34 = vpop.eup %1850  ;;  %v2987_v23 = vadd.f32 1.0, %v1847_v61  ;;  %v2989_v20 = vadd.f32 1.0, %v1849_v2  ;;  %v1300_v36 = vsel %vm221_vm0, %v1233_v60, 0.0  ;;  %v1506_v28 = vperm.slane %v2937_v37, %v2400_v53 }
 0x1c5   : > { %v1159_v10 = vand.u32 2147483648, %v2838_v39  ;;  %1854 = vpow2.f32 %v1675_v17  ;;  %v2995_v58 = vadd.f32 %v1296_v63, %v1295_v50  ;;  %v2997_v8 = vadd.f32 %v1364_v15, %v1363_v62 }
 0x1c6   : > { %vm1153_vm14 = vweird.f32 %v2838_v39  ;;  %1856 = vrcp.f32 %v2987_v23  ;;  %v1301_v5 = vsel %vm223_vm1, %v1234_v29, 0.0  ;;  %vm3010_vm15 = vcmp.eq.f32.partialorder %v1157_v49, 8.507059e+37 }
 0x1c7   : > { %v3001_v44 = vpop.eup %1852  ;;  %vm3006_vm13 = vmor %vm1153_vm14, %vm1154_vm9  ;;  %1858 = vrcp.f32 %v2989_v20  ;;  %v3015_v3 = vadd.f32 1.0, %v1851_v34  ;;  %v1136_v33 = vmul.f32 %v2943_v1, %v1135_v21  ;;  %v1160_v38 = vor.u32 1.1754944e-38, %v1159_v10 }
 0x1c8   : > { %v1156_v39 = vsel %vm3006_vm13, %v2903_v31, %v1152_v13  ;;  %v924_v35 = vmul.f32 %v3001_v44, %v2962_v24  ;;  %1860 = vpow2.f32 %v1674_v43  ;;  %vm1138_vm8 = vweird.f32 %v2890_v22  ;;  %v1890_v13 = vld [vmem:[%s2054_s10 + $0xd8] sm:$0x3] }
 0x1c9   : > { %v1142_v41 = vand.u32 2147483647, %v2890_v22  ;;  %v1144_v50 = vand.u32 2147483648, %v2890_v22  ;;  %v1366_v7 = vrot.slane %v2997_v8, 4  ;;  %v1485_v11 = vperm.slane %v2968_v46, %v2400_v53 }
 0x1ca   : > { %vm1139_vm11 = vweird.f32 %v2943_v1  ;;  %v925_v31 = vsub.f32 1.0, %v924_v35  ;;  %v1302_v26 = vadd.f32 %v1301_v5, %v1300_v36  ;;  %v3032_v30 = vsel %vm3010_vm15, %v1160_v38, %v1156_v39 }
 0x1cb   : > { %v1855_v54 = vpop.eup %1854  ;;  %v932_v18 = vand.u32 2147483647, %v2962_v24  ;;  %1862 = vrcp.f32 %v3015_v3  ;;  %v1137_v61 = vadd.f32 %v2943_v1, %v1136_v33  ;;  %vm929_vm7 = vweird.f32 %v3001_v44  ;;  %vm3055_vm12 = vmor %vm1138_vm8, %vm1139_vm11 }
 0x1cc   : > { %v3036_v27 = vpop.eup %1856  ;;  %v926_v46 = vmul.f32 %v3001_v44, %v925_v31  ;;  %v934_v59 = vand.u32 2147483648, %v2962_v24  ;;  %vm3042_vm6 = vcmp.eq.f32.partialorder %v1142_v41, 8.507059e+37  ;;  %v1145_v2 = vor.u32 1.1754944e-38, %v1144_v50 }
 0x1cd   : > { %v1859_v60 = vpop.eup %1858  ;;  %v1164_v63 = vmul.f32 %v3036_v27, %v2987_v23  ;;  %v3048_v62 = vmul.f32 -1.442695, %v611_v42  ;;  %v1486_v15 = vsel %vm1470_vm10, %v1485_v11, %v1484_v0  ;;  %vm928_vm9 = vweird.f32 %v2962_v24 }
 0x1ce   : > { %v1861_v49 = vpop.eup %1860  ;;  %v927_v29 = vadd.f32 %v3001_v44, %v926_v46  ;;  %v939_v43 = vmul.f32 %v1859_v60, %v2989_v20  ;;  %v1303_v34 = vrot.slane %v1302_v26, 4  ;;  %v1250_v21 = vmul.f32 %v1890_v13, %v3032_v30  ;;  %vm3066_vm14 = vmor %vm928_vm9, %vm929_vm7 }
 0x1cf   : > { %vm3070_vm13 = vcmp.eq.f32.partialorder %v932_v18, 8.507059e+37  ;;  %v3074_v36 = vadd.f32 1.0, %v1855_v54  ;;  %v1141_v24 = vsel %vm3055_vm12, %v2943_v1, %v1137_v61  ;;  %v935_v5 = vor.u32 1.1754944e-38, %v934_v59  ;;  %v1891_v61 = vld [vmem:[%s2054_s10 + $0x60] sm:$0xff] }
 0x1d0   : > { %v931_v10 = vsel %vm3066_vm14, %v3001_v44, %v927_v29  ;;  %v940_v19 = vsub.f32 1.0, %v939_v43  ;;  %v1165_v39 = vsub.f32 1.0, %v1164_v63  ;;  %v949_v33 = vand.u32 2147483648, %v2989_v20  ;;  %v1893_v43 = vld [vmem:[%s2054_s10 + $0x68] sm:$0x3] }
 0x1d1   : > { %v3082_v9 = vpop.eup %1862  ;;  %1864 = vrcp.f32 %v3074_v36  ;;  %v3086_v35 = vadd.f32 1.0, %v1861_v49  ;;  %vm944_vm15 = vweird.f32 %v1859_v60  ;;  %v947_v1 = vand.u32 2147483647, %v2989_v20 }
 0x1d2   : > { %v941_v38 = vmul.f32 %v1859_v60, %v940_v19  ;;  %v1179_v41 = vmul.f32 %v3082_v9, %v3015_v3  ;;  %v3091_v44 = vadd.f32 %v1303_v34, %v1302_v26  ;;  %vm3439_vm8 = vcmask 1045509  }
 0x1d3   : > { %v3095_v50 = vsel %vm3439_vm8, %v1486_v15, %v2966_v47  ;;  %v3098_v11 = vsel %vm223_vm1, %v1250_v21, 0.0  ;;  %v3102_v31 = vsel %vm3070_vm13, %v935_v5, %v931_v10  ;;  %vm1168_vm11 = vweird.f32 %v2987_v23 }
 0x1d4   : > { %v942_v42 = vadd.f32 %v1859_v60, %v941_v38  ;;  %vm943_vm7 = vweird.f32 %v2989_v20  ;;  %v1180_v54 = vsub.f32 1.0, %v1179_v41  ;;  %v3108_v26 = vsel %vm3042_vm6, %v1145_v2, %v1141_v24  ;;  %v1895_v24 = vld [vmem:[%s2054_s10 + $0xe8] sm:$0x3] }
 0x1d5   : > { %v1166_v47 = vmul.f32 %v3036_v27, %v1165_v39  ;;  %vm945_vm12 = vmor %vm943_vm7, %vm944_vm15  ;;  %v950_v18 = vor.u32 1.1754944e-38, %v949_v33  ;;  %1866 = vrcp.f32 %v3086_v35  ;;  %v1235_v46 = vmul.f32 %v1891_v61, %v3102_v31  ;;  %v614_v39 = vpop.xlane.xlu1 %613 }
 0x1d6   : > { %v1172_v59 = vand.u32 2147483647, %v2987_v23  ;;  %v946_v63 = vsel %vm945_vm12, %v1859_v60, %v942_v42  ;;  %vm948_vm9 = vcmp.eq.f32.partialorder %v947_v1, 8.507059e+37  ;;  %v1174_v17 = vand.u32 2147483648, %v2987_v23 }
 0x1d7   : > { %v1865_v20 = vpop.eup %1864  ;;  %v3116_v2 = vsel %vm948_vm9, %v950_v18, %v946_v63  ;;  %v1181_v49 = vmul.f32 %v3082_v9, %v1180_v54  ;;  %v1189_v15 = vand.u32 2147483648, %v3015_v3  ;;  %v3122_v29 = vmul.f32 %v1892_v12, %v3108_v26 }
 0x1d8   : > { %v1236_v34 = vmul.f32 %v1893_v43, %v3116_v2  ;;  %vm1183_vm6 = vweird.f32 %v3015_v3  ;;  %v969_v60 = vmul.f32 %v1865_v20, %v3074_v36  ;;  %v1167_v13 = vadd.f32 %v3036_v27, %v1166_v47 }
 0x1d9   : > { %vm1169_vm14 = vweird.f32 %v3036_v27  ;;  %v1187_v21 = vand.u32 2147483647, %v3015_v3  ;;  %v977_v0 = vand.u32 2147483647, %v3074_v36  ;;  %v1309_v22 = vsel %vm221_vm0, %v1235_v46, 0.0 }
 0x1da   : > { %vm3134_vm13 = vcmp.eq.f32.partialorder %v1172_v59, 8.507059e+37  ;;  %v1310_v10 = vsel %vm223_vm1, %v1236_v34, 0.0  ;;  %v970_v5 = vsub.f32 1.0, %v969_v60  ;;  %v979_v19 = vand.u32 2147483648, %v3074_v36  ;;  %vm3146_vm8 = vmor %vm1168_vm11, %vm1169_vm14 }
 0x1db   : > { %v1867_v33 = vpop.eup %1866  ;;  %v1311_v38 = vadd.f32 %v1310_v10, %v1309_v22  ;;  %v1182_v1 = vadd.f32 %v3082_v9, %v1181_v49  ;;  %vm1184_vm15 = vweird.f32 %v3082_v9  ;;  %v1190_v41 = vor.u32 1.1754944e-38, %v1189_v15 }
 0x1dc   : > { %v971_v54 = vmul.f32 %v1865_v20, %v970_v5  ;;  %vm973_vm7 = vweird.f32 %v3074_v36  ;;  %vm974_vm12 = vweird.f32 %v1865_v20  ;;  %v954_v47 = vmul.f32 %v1867_v33, %v3086_v35  ;;  %vm3164_vm11 = vmor %vm1183_vm6, %vm1184_vm15 }
 0x1dd   : > { %v1171_v18 = vsel %vm3146_vm8, %v3036_v27, %v1167_v13  ;;  %v1312_v23 = vrot.slane %v1311_v38, 4  ;;  %1868 = vpow2.f32 %v3048_v62  ;;  %v1691_v61 = vmul.f32 -1.442695, %v614_v39  ;;  %vm975_vm14 = vmor %vm973_vm7, %vm974_vm12 }
 0x1de   : > { %v972_v46 = vadd.f32 %v1865_v20, %v971_v54  ;;  %vm3168_vm9 = vcmp.eq.f32.partialorder %v977_v0, 8.507059e+37  ;;  %v980_v63 = vor.u32 1.1754944e-38, %v979_v19  ;;  %v955_v49 = vsub.f32 1.0, %v954_v47  ;;  %v1896_v47 = vld [vmem:[%s2054_s10 + $0x70] sm:$0xff] }
 0x1df   : > { %v1186_v27 = vsel %vm3164_vm11, %v3082_v9, %v1182_v1  ;;  %v962_v62 = vand.u32 2147483647, %v3086_v35  ;;  %v964_v3 = vand.u32 2147483648, %v3086_v35  ;;  %1870 = vpow2.f32 %v1691_v61 }
 0x1e0   : > { %v1488_v15 = vperm.slane %v3116_v2, %v2400_v53  ;;  %v976_v12 = vsel %vm975_vm14, %v1865_v20, %v972_v46  ;;  %v956_v43 = vmul.f32 %v1867_v33, %v955_v49  ;;  %vm959_vm6 = vweird.f32 %v1867_v33 }
 0x1e1   : > { %v1175_v34 = vor.u32 1.1754944e-38, %v1174_v17  ;;  %v1313_v60 = vadd.f32 %v1312_v23, %v1311_v38  ;;  %vm1188_vm15 = vcmp.eq.f32.partialorder %v1187_v21, 8.507059e+37  ;;  %v981_v9 = vsel %vm3168_vm9, %v980_v63, %v976_v12 }
 0x1e2   : > { %v1487_v13 = vperm.slane %v3102_v31, %v2386_v48  ;;  %v3189_v0 = vsel %vm1188_vm15, %v1190_v41, %v1186_v27  ;;  %v957_v20 = vadd.f32 %v1867_v33, %v956_v43  ;;  %vm958_vm8 = vweird.f32 %v3086_v35  ;;  %v1894_v31 = vld [vmem:[%s2054_s10 + $0x78] sm:$0x3] }
 0x1e3   : > { %v1869_v2 = vpop.eup %1868  ;;  %v1305_v22 = vrot.slane %v3091_v44, 2  ;;  %v3195_v17 = vsel %vm3134_vm13, %v1175_v34, %v1171_v18  ;;  %vm960_vm7 = vmor %vm958_vm8, %vm959_vm6  ;;  %vm963_vm12 = vcmp.eq.f32.partialorder %v962_v62, 8.507059e+37  ;;  %v965_v21 = vor.u32 1.1754944e-38, %v964_v3 }
 0x1e4   : > { %v1489_v10 = vsel %vm1470_vm10, %v1488_v15, %v1487_v13  ;;  %v1238_v5 = vmul.f32 %v1894_v31, %v981_v9  ;;  %v961_v19 = vsel %vm960_vm7, %v1867_v33, %v957_v20  ;;  %v3200_v39 = vadd.f32 1.0, %v1869_v2  ;;  %v1897_v33 = vld [vmem:[%s2054_s10 + $0xe0] sm:$0xff] }
 0x1e5   : > { %v1871_v35 = vpop.eup %1870  ;;  %v1372_v38 = vsel %vm221_vm0, %v3122_v29, 0.0  ;;  %v1252_v1 = vmul.f32 %v1895_v24, %v3189_v0  ;;  %v966_v41 = vsel %vm963_vm12, %v965_v21, %v961_v19  ;;  %v1314_v42 = vrot.slane %v1313_v60, 2 }
 0x1e6   : > { %v1491_v54 = vperm.slane %v981_v9, %v2400_v53  ;;  %v1237_v18 = vmul.f32 %v1896_v47, %v966_v41  ;;  %v1490_v23 = vperm.slane %v966_v41, %v2386_v48  ;;  %1872 = vrcp.f32 %v3200_v39 }
 0x1e7   : > { %v1251_v61 = vmul.f32 %v1897_v33, %v3195_v17  ;;  %vm3449_vm13 = vcmask 1046534   ;;  %vm1533_vm11 = vcmask 80896   ;;  %v3219_v29 = vadd.f32 1.0, %v1871_v35 }
 0x1e8   : > { %v1522_v36 = vsel %vm3449_vm13, %v1489_v10, %v3095_v50  ;;  %v1319_v46 = vsel %vm223_vm1, %v1238_v5, 0.0  ;;  %v1318_v59 = vsel %vm221_vm0, %v1237_v18, 0.0  ;;  %v1492_v63 = vsel %vm1470_vm10, %v1491_v54, %v1490_v23  ;;  %vm3454_vm7 = vmmov %vm3449_vm13 }
 0x1e9   : > { %v1306_v49 = vadd.f32 %v1305_v22, %v3091_v44  ;;  %v1374_v27 = vadd.f32 %v3098_v11, %v1372_v38  ;;  %v1382_v50 = vsel %vm223_vm1, %v1252_v1, 0.0  ;;  %v1320_v62 = vadd.f32 %v1319_v46, %v1318_v59 }
 0x1ea   : > { %vm3450_vm9 = vcmask 1047559   ;;  %v3231_v15 = vadd.f32 %v1357_v14, %v2865_v6  ;;  %v3240_v44 = vsel %vm1470_vm10, %v1506_v28, %v1505_v56  ;;  %1874 = vrcp.f32 %v3219_v29 }
 0x1eb   : > { %v1523_v3 = vsel %vm3450_vm9, %v1492_v63, %v1522_v36  ;;  %v1315_v11 = vadd.f32 %v1314_v42, %v1313_v60  ;;  %v3248_v12 = vadd.f32 %v1366_v7, %v2997_v8  ;;  %v1381_v6 = vsel %vm221_vm0, %v1251_v61, 0.0  ;;  %vm3455_vm13 = vmmov %vm3450_vm9 }
 0x1ec   : > { %1534 = vst.msk [vmem:[%s3217_s24] sm:$0xff] %vm1533_vm11, %v1523_v3  ;;  %v1321_v14 = vrot.slane %v1320_v62, 4  ;;  %v1298_v32 = vrot.slane %v2995_v58, 1  ;;  %v1873_v37 = vpop.eup %1872  ;;  %v1509_v56 = vperm.slane %v3032_v30, %v2400_v53  ;;  %v1383_v28 = vadd.f32 %v1382_v50, %v1381_v6 }
 0x1ed   : > { %v1307_v43 = vrot.slane %v1306_v49, 1  ;;  %v1422_v34 = vsel %vm387_vm2, %v2734_v51, %v2729_v45  ;;  %v1375_v60 = vrot.slane %v1374_v27, 4  ;;  %v1508_v8 = vperm.slane %v3108_v26, %v2386_v48 }
 0x1ee   : > { %v1194_v7 = vmul.f32 %v1873_v37, %v3200_v39  ;;  %v1322_v9 = vadd.f32 %v1321_v14, %v1320_v62  ;;  %v1202_v13 = vand.u32 2147483647, %v3200_v39  ;;  %v1290_v20 = vadd.f32 %v1289_v40, %v2818_v4 }
 0x1ef   : > { %v1316_v30 = vrot.slane %v1315_v11, 1  ;;  %v3266_v2 = vsel %vm389_vm3, %v2835_v55, %v1422_v34  ;;  %v1299_v45 = vadd.f32 %v1298_v32, %v2995_v58  ;;  %v1415_v26 = vsel %vm387_vm2, %v2717_v52, %v2638_v57 }
 0x1f0   : > { %v1195_v22 = vsub.f32 1.0, %v1194_v7  ;;  %v1323_v51 = vrot.slane %v1322_v9, 2  ;;  %v1875_v21 = vpop.eup %1874  ;;  %v1384_v10 = vrot.slane %v1383_v28, 4  ;;  %v1204_v31 = vand.u32 2147483648, %v3200_v39 }
 0x1f1   : > { %v1308_v4 = vadd.f32 %v1307_v43, %v1306_v49  ;;  %v1416_v40 = vsel %vm389_vm3, %v2749_v25, %v1415_v26  ;;  %vm1199_vm14 = vweird.f32 %v1873_v37  ;;  %v1209_v5 = vmul.f32 %v1875_v21, %v3219_v29 }
 0x1f2   : > { %v1196_v55 = vmul.f32 %v1873_v37, %v1195_v22  ;;  %v1324_v19 = vadd.f32 %v1323_v51, %v1322_v9  ;;  %vm1198_vm6 = vweird.f32 %v3200_v39  ;;  %vm3278_vm15 = vcmp.eq.f32.partialorder %v1202_v13, 8.507059e+37 }
 0x1f3   : > { %v1317_v57 = vadd.f32 %v1316_v30, %v1315_v11  ;;  %v1417_v52 = vsel %vm391_vm4, %v1290_v20, %v1416_v40  ;;  %v1210_v38 = vsub.f32 1.0, %v1209_v5  ;;  %vm1200_vm2 = vmor %vm1198_vm6, %vm1199_vm14  ;;  %v1205_v1 = vor.u32 1.1754944e-38, %v1204_v31 }
 0x1f4   : > { %v1197_v35 = vadd.f32 %v1873_v37, %v1196_v55  ;;  %v1325_v24 = vrot.slane %v1324_v19, 1  ;;  %v1418_v25 = vsel %vm393_vm5, %v1299_v45, %v1417_v52  ;;  %v1217_v41 = vand.u32 2147483647, %v3219_v29 }
 0x1f5   : > { %v1219_v39 = vand.u32 2147483648, %v3219_v29  ;;  %vm3453_vm3 = vcmask 1045509   ;;  %v1211_v47 = vmul.f32 %v1875_v21, %v1210_v38  ;;  %vm1214_vm8 = vweird.f32 %v1875_v21 }
 0x1f6   : > { %v1419_v42 = vsel %vm3453_vm3, %v1308_v4, %v1418_v25  ;;  %v1201_v54 = vsel %vm1200_vm2, %v1873_v37, %v1197_v35  ;;  %v1326_v18 = vadd.f32 %v1325_v24, %v1324_v19  ;;  %v1376_v23 = vadd.f32 %v1375_v60, %v1374_v27  ;;  %vm3456_vm6 = vmmov %vm3453_vm3 }
 0x1f7   : > { %v1512_v33 = vperm.slane %v3189_v0, %v2400_v53  ;;  %v1206_v61 = vsel %vm3278_vm15, %v1205_v1, %v1201_v54  ;;  %v1420_v36 = vsel %vm3454_vm7, %v1317_v57, %v1419_v42  ;;  %v1385_v46 = vadd.f32 %v1384_v10, %v1383_v28  ;;  %v1899_v28 = vld [vmem:[%s2054_s10 + $0xf8] sm:$0x3]  ;;  %vm3457_vm15 = vmmov %vm3454_vm7 }
 0x1f8   : > { %v1212_v59 = vadd.f32 %v1875_v21, %v1211_v47  ;;  %vm1213_vm12 = vweird.f32 %v3219_v29  ;;  %v1421_v63 = vsel %vm3455_vm13, %v1326_v18, %v1420_v36  ;;  %v1359_v49 = vrot.slane %v3231_v15, 2  ;;  %v1898_v29 = vld [vmem:[%s2054_s10 + $0xf0] sm:$0xff]  ;;  %vm3458_vm2 = vmmov %vm3455_vm13 }
 0x1f9   : > { %v1368_v50 = vrot.slane %v3248_v12, 2  ;;  %v1511_v27 = vperm.slane %v3195_v17, %v2386_v48  ;;  %vm1215_vm9 = vmor %vm1213_vm12, %vm1214_vm8  ;;  %v1220_v0 = vor.u32 1.1754944e-38, %v1219_v39  ;;  %1431 = vst.msk [vmem:[%s3300_s27] sm:$0xff] %vm221_vm0, %v1421_v63  ;;  %v1510_v62 = vsel %vm1470_vm10, %v1509_v56, %v1508_v8 }
 0x1fa   : > { %v1253_v3 = vmul.f32 %v1898_v29, %v1206_v61  ;;  %v1216_v11 = vsel %vm1215_vm9, %v1875_v21, %v1212_v59  ;;  %vm1218_vm14 = vcmp.eq.f32.partialorder %v1217_v41, 8.507059e+37  ;;  %v1527_v6 = vsel %vm393_vm5, %v3240_v44, %v2947_v16 }
 0x1fb   : > { %v1377_v14 = vrot.slane %v1376_v23, 2  ;;  %v1513_v17 = vsel %vm1470_vm10, %v1512_v33, %v1511_v27  ;;  %v1221_v32 = vsel %vm1218_vm14, %v1220_v0, %v1216_v11  ;;  %v1514_v37 = vperm.slane %v1206_v61, %v2386_v48 }
 0x1fc   : > { %v1254_v43 = vmul.f32 %v1899_v28, %v1221_v32  ;;  %v1515_v34 = vperm.slane %v1221_v32, %v2400_v53  ;;  %v1386_v56 = vrot.slane %v1385_v46, 2  ;;  %v1360_v60 = vadd.f32 %v1359_v49, %v3231_v15 }
 0x1fd   : > { %v1369_v8 = vadd.f32 %v1368_v50, %v3248_v12  ;;  %v1528_v7 = vsel %vm3456_vm6, %v1510_v62, %v1527_v6  ;;  %v1390_v44 = vsel %vm221_vm0, %v1253_v3, 0.0  ;;  %v1378_v53 = vadd.f32 %v1377_v14, %v1376_v23 }
 0x1fe   : > { %v1529_v16 = vsel %vm3457_vm15, %v1513_v17, %v1528_v7  ;;  %v1391_v9 = vsel %vm223_vm1, %v1254_v43, 0.0  ;;  %v1516_v48 = vsel %vm1470_vm10, %v1515_v34, %v1514_v37  ;;  %v1387_v15 = vadd.f32 %v1386_v56, %v1385_v46  ;;  %vm3459_vm1 = vmmov %vm3453_vm3 }
 0x1ff   : > { %v1392_v13 = vadd.f32 %v1391_v9, %v1390_v44  ;;  %v1530_v20 = vsel %vm3458_vm2, %v1516_v48, %v1529_v16  ;;  %v1361_v12 = vrot.slane %v1360_v60, 1  ;;  %v1370_v22 = vrot.slane %v1369_v8, 1  ;;  %vm3460_vm10 = vmmov %vm3454_vm7 }
 0x200   : > { %1535 = vst.msk [vmem:[%s3217_s24 + $0x8] sm:$0xff] %vm1533_vm11, %v1530_v20  ;;  %v1379_v45 = vrot.slane %v1378_v53, 1  ;;  %v1388_v26 = vrot.slane %v1387_v15, 1  ;;  %vm3461_vm11 = vmmov %vm3458_vm2 }
 0x201   : > { %v1393_v30 = vrot.slane %v1392_v13, 4  ;;  %v1362_v21 = vadd.f32 %v1361_v12, %v1360_v60  ;;  %v1371_v31 = vadd.f32 %v1370_v22, %v1369_v8 }
 0x202   : > { %v1380_v4 = vadd.f32 %v1379_v45, %v1378_v53  ;;  %v1389_v55 = vadd.f32 %v1388_v26, %v1387_v15 }
 0x203   : > { %v1394_v51 = vadd.f32 %v1393_v30, %v1392_v13  ;;  %v1424_v19 = vsel %vm391_vm4, %v1362_v21, %v3266_v2 }
 0x204   : > { %v1425_v58 = vsel %vm393_vm5, %v1371_v31, %v1424_v19 }
 0x205   : > { %v1395_v10 = vrot.slane %v1394_v51, 2  ;;  %v1426_v52 = vsel %vm3459_vm1, %v1380_v4, %v1425_v58 }
 0x206   : > { %v1427_v35 = vsel %vm3460_vm10, %v1389_v55, %v1426_v52 }
 0x207   : > { %v1396_v40 = vadd.f32 %v1395_v10, %v1394_v51 }
 0x209   : > { %v1397_v5 = vrot.slane %v1396_v40, 1 }
 0x20b   : > { %v1398_v57 = vadd.f32 %v1397_v5, %v1396_v40 }
 0x20d   : > { %v1428_v38 = vsel %vm3461_vm11, %v1398_v57, %v1427_v35 }
 0x20e   : > { %1432 = vst.msk [vmem:[%s3300_s27 + $0x8] sm:$0xff] %vm221_vm0, %v1428_v38 }
 0x20f   : > { %1927 = shalt.err (!%p1924_p4)
}
 0x210   : > { %s1964_s19 = smov 128   ;;  %s1965_s20 = smov 8  }
 0x211   : > { %1703 = dma.vmem_to_hbm [thread:$0]  (%p2024_p5), %s1555_s5, 256, %s1557_s6, %s1537_s28, %s1964_s19, %s1964_s19, %s1965_s20  }
 0x212 PF: > { %p1709_p7 = scmp.ge.s32.totalorder %s1962_s15, 2  ;;  %s1575_s24 = sand.u32 1, %s1950_s12  }
 0x213   : > { %s1576_s25 = scalar_lea.sflag [#allocation3], %s1575_s24 }
 0x214   : > { %p1706_p8 = pnand %p1709_p7, %p2028_p6 }
 0x216   : > { %p1707_p9 = pneg %p1706_p8 }
 0x218   : > { %1945 = dma.done.wait (%p1707_p9), %s1576_s25, 256  }
 0x219   : > { %1947 = vsyncadd (%p1707_p9), %s1576_s25, 4294967040  ;;  %p14_p10 = scmp.ge.s32.totalorder %s2011_s18, 4   ;;  %s3462_s12 = smov %s1954_s13 }
 0x21a   : > { %s3463_s13 = smov %s1958_s14  ;;  %s3464_s14 = smov %s2022_s21 }
 0x21b   : > { %s3465_s15 = smov %s2011_s18  ;;  %16 = sbr.rel (!%p14_p10) target bundleno = 3 (0x3), region = 75 }
 0x220   :  { %1590 = vsyncpa [#allocation3], 1 }
 0x221   :  { %1592 = vsyncpa [#allocation3 + $0x1], 1 }

</bundles_post_ra>
